<compile_context>
chip_gen: v6e
topology: v6e:2x2x1
jax: 0.10.0
libtpu: 0.0.40
codegen_flags: <defaults>
</compile_context>

<pallas_src>
import jax
import jax.numpy as jnp
from jax import lax
from jax.experimental import pallas as pl
from jax.experimental.pallas import tpu as pltpu


def _round_up(x, m):
    return ((x + m - 1) // m) * m


def _ceil_div(a, b):
    return -(-a // b)


# ----------------------------------------------------------------------------
# Pallas kernel: all LSTM layers, whole sequence, one call.
# grid = (batch_tiles, n_layers)
# ----------------------------------------------------------------------------
def _encoder_lstm_kernel(x_ref, w_ref, b_ref, h0_ref, c0_ref,
                         out_ref, hn_ref, cn_ref, xw_ref):
    layer = pl.program_id(1)
    T, Bt, Fp = x_ref.shape
    Hp = out_ref.shape[-1]
    wdt = w_ref.dtype
    bias = b_ref[0]                         # (1, 4*Hp), f32

    # ---- Input projection for the whole sequence: one big MXU matmul. ----
    # Weight rows [0:Fp] hold W_ih^T (zero-padded); rows [Fp:Fp+Hp] hold W_hh^T.
    @pl.when(layer == 0)
    def _():
        x2d = x_ref[...].reshape(T * Bt, Fp).astype(wdt)
        xw = jnp.dot(x2d, w_ref[0, :Fp, :],
                     preferred_element_type=jnp.float32)
        xw_ref[...] = (xw + bias).reshape(T, Bt, 4 * Hp)

    @pl.when(layer > 0)
    def _():
        # Previous layer's activations are resident in out_ref (Hp lanes wide;
        # padded lanes are provably zero, and weight rows beyond H are zero).
        x2d = out_ref[...].reshape(T * Bt, Hp).astype(wdt)
        xw = jnp.dot(x2d, w_ref[0, :Hp, :],
                     preferred_element_type=jnp.float32)
        xw_ref[...] = (xw + bias).reshape(T, Bt, 4 * Hp)

    # ---- Recurrent time loop: only the small h @ W_hh matmul per step. ----
    w_hh = w_ref[0, Fp:Fp + Hp, :]          # (Hp, 4*Hp)

    def step(t, carry):
        h, c = carry
        gates = xw_ref[t] + jnp.dot(h.astype(wdt), w_hh,
                                    preferred_element_type=jnp.float32)
        # Each gate occupies Hp (multiple of 128) lanes -> lane-aligned slices.
        # Elementwise gate math stays in f32 (v5e VPU/EUP have no bf16).
        i_g = jax.nn.sigmoid(gates[:, 0 * Hp:1 * Hp])
        f_g = jax.nn.sigmoid(gates[:, 1 * Hp:2 * Hp])
        g_g = jnp.tanh(gates[:, 2 * Hp:3 * Hp])
        o_g = jax.nn.sigmoid(gates[:, 3 * Hp:4 * Hp])
        c_new = f_g * c + i_g * g_g
        h_new = o_g * jnp.tanh(c_new)
        # out_ref doubles as the inter-layer activation buffer; each
        # timestep's row is fully overwritten before the next layer reads it.
        out_ref[t] = h_new.astype(out_ref.dtype)
        return h_new, c_new

    h_t, c_t = lax.fori_loop(0, T, step, (h0_ref[0], c0_ref[0]))
    # Final states written once per layer (no per-timestep dead stores).
    hn_ref[0] = h_t.astype(hn_ref.dtype)
    cn_ref[0] = c_t.astype(cn_ref.dtype)


# ----------------------------------------------------------------------------
# Wrapper: weight packing + pallas_call
# ----------------------------------------------------------------------------
def _pack_lstm_params(layers, embedding_dim, hidden_dim, Fp, Hp, param_dtype):
    """Fuse (W_ih, W_hh, b_ih+b_hh) of every layer into one stacked weight
    (L, Fp+Hp, 4*Hp) and bias (L, 1, 4*Hp); each of the i/f/g/o gate blocks is
    padded to Hp columns so gate slices are lane-aligned inside the kernel."""
    H = hidden_dim

    def pad_gates(m):                              # (rows, 4H) -> (rows, 4Hp)
        rows = m.shape[0]
        return jnp.pad(m.reshape(rows, 4, H),
                       ((0, 0), (0, 0), (0, Hp - H))).reshape(rows, 4 * Hp)

    w_all, b_all = [], []
    for l, lp in enumerate(layers):
        in_dim = embedding_dim if l == 0 else H
        w_cat = jnp.zeros((Fp + Hp, 4 * Hp), jnp.float32)
        w_cat = w_cat.at[:in_dim, :].set(
            pad_gates(lp["w_ih"].T.astype(jnp.float32)))
        w_cat = w_cat.at[Fp:Fp + H, :].set(
            pad_gates(lp["w_hh"].T.astype(jnp.float32)))
        bias = pad_gates(
            (lp["b_ih"] + lp["b_hh"]).reshape(1, 4 * H).astype(jnp.float32))
        w_all.append(w_cat)
        b_all.append(bias)
    return jnp.stack(w_all).astype(param_dtype), jnp.stack(b_all)


def encoder_forward(params, inputs, h0=None, c0=None, *,
                    param_dtype=jnp.float32):
    """inputs: (batch, seq, embedding_dim).  Returns (outputs, hn, cn) with
    outputs (batch, seq, hidden), hn/cn (n_layers, batch, hidden)."""
    B, T, E = inputs.shape
    layers = params["layers"]
    L = len(layers)
    H = params["init_h"].shape[-1]

    # Lane / sublane aligned padded sizes.
    Hp = _round_up(H, 128)
    Fp = max(_round_up(E, 128), Hp)               # layer-input feature width
    # Batch padded to full sublane tiles; >= 2 tiles lets v7x's two
    # TensorCores split the batch ("parallel" grid axis).
    Bt = 8 if B <= 8 else _round_up(_ceil_div(B, 2), 8)
    nb = _ceil_div(B, Bt)
    Bp = nb * Bt

    w_all, b_all = _pack_lstm_params(layers, E, H, Fp, Hp, param_dtype)

    # Time-major, zero-padded input: (T, Bp, Fp).
    x = jnp.transpose(inputs, (1, 0, 2)).astype(jnp.float32)
    x = jnp.pad(x, ((0, 0), (0, Bp - B), (0, Fp - E)))

    if h0 is None and c0 is None:
        h0 = jnp.broadcast_to(params["init_h"], (L, B, H))
        c0 = jnp.broadcast_to(params["init_c"], (L, B, H))
    h0 = jnp.pad(h0.astype(jnp.float32), ((0, 0), (0, Bp - B), (0, Hp - H)))
    c0 = jnp.pad(c0.astype(jnp.float32), ((0, 0), (0, Bp - B), (0, Hp - H)))

    grid_spec = pltpu.PrefetchScalarGridSpec(
        num_scalar_prefetch=0,
        grid=(nb, L),
        in_specs=[
            pl.BlockSpec((T, Bt, Fp), lambda b, l: (0, b, 0)),           # x
            pl.BlockSpec((1, Fp + Hp, 4 * Hp), lambda b, l: (l, 0, 0)),  # W
            pl.BlockSpec((1, 1, 4 * Hp), lambda b, l: (l, 0, 0)),        # bias
            pl.BlockSpec((1, Bt, Hp), lambda b, l: (l, b, 0)),           # h0
            pl.BlockSpec((1, Bt, Hp), lambda b, l: (l, b, 0)),           # c0
        ],
        out_specs=[
            pl.BlockSpec((T, Bt, Hp), lambda b, l: (0, b, 0)),           # outs
            pl.BlockSpec((1, Bt, Hp), lambda b, l: (l, b, 0)),           # h_T
            pl.BlockSpec((1, Bt, Hp), lambda b, l: (l, b, 0)),           # c_T
        ],
        scratch_shapes=[
            # Whole-sequence pre-projected gates for the current layer.
            pltpu.VMEM((T, Bt, 4 * Hp), jnp.float32),
        ],
    )
    out_shapes = (
        jax.ShapeDtypeStruct((T, Bp, Hp), jnp.float32),
        jax.ShapeDtypeStruct((L, Bp, Hp), jnp.float32),
        jax.ShapeDtypeStruct((L, Bp, Hp), jnp.float32),
    )
    # TODO(synk): for very large H/T on v7x (64 MiB VMEM) the whole-sequence
    # x / xw blocks and per-layer weight would need time-chunking or a raised
    # vmem_limit_bytes.
    outs, hn, cn = pl.pallas_call(
        _encoder_lstm_kernel,
        out_shape=out_shapes,
        grid_spec=grid_spec,
        compiler_params=pltpu.CompilerParams(
            dimension_semantics=("parallel", "arbitrary")),
    )(x, w_all, b_all, h0, c0)

    outputs = jnp.transpose(outs[:, :B, :H], (1, 0, 2))   # (batch, seq, H)
    return outputs, hn[:, :B, :H], cn[:, :B, :H]


# ----------------------------------------------------------------------------
# Encoder parameter init (matches nn.LSTM shapes; init_h/init_c are zeros)
# ----------------------------------------------------------------------------
def init_encoder_params(key, embedding_dim, hidden_dim, n_layers):
    params = {
        "layers": [],
        "init_h": jnp.zeros((n_layers, 1, hidden_dim), jnp.float32),
        "init_c": jnp.zeros((n_layers, 1, hidden_dim), jnp.float32),
    }
    k = 1.0 / jnp.sqrt(jnp.float32(hidden_dim))
    for l in range(n_layers):
        in_dim = embedding_dim if l == 0 else hidden_dim
        key, k0, k1, k2, k3 = jax.random.split(key, 5)
        params["layers"].append({
            "w_ih": jax.random.uniform(k0, (4 * hidden_dim, in_dim),
                                       jnp.float32, -k, k),
            "w_hh": jax.random.uniform(k1, (4 * hidden_dim, hidden_dim),
                                       jnp.float32, -k, k),
            "b_ih": jax.random.uniform(k2, (4 * hidden_dim,),
                                       jnp.float32, -k, k),
            "b_hh": jax.random.uniform(k3, (4 * hidden_dim,),
                                       jnp.float32, -k, k),
        })
    return params


# ----------------------------------------------------------------------------
# Pure-JAX reference (lax.scan) for a sanity check
# ----------------------------------------------------------------------------
def _lstm_layer_ref(x_seq, w_ih, w_hh, b_ih, b_hh, h0, c0):
    H = h0.shape[-1]

    def step(carry, x_t):
        h, c = carry
        gates = x_t @ w_ih.T + b_ih + h @ w_hh.T + b_hh
        i = jax.nn.sigmoid(gates[:, :H])
        f = jax.nn.sigmoid(gates[:, H:2 * H])
        g = jnp.tanh(gates[:, 2 * H:3 * H])
        o = jax.nn.sigmoid(gates[:, 3 * H:])
        c = f * c + i * g
        h = o * jnp.tanh(c)
        return (h, c), h

    (hn, cn), outs = lax.scan(step, (h0, c0), x_seq)
    return outs, hn, cn


def encoder_forward_ref(params, inputs, h0=None, c0=None):
    B = inputs.shape[0]
    L = len(params["layers"])
    H = params["init_h"].shape[-1]
    x = jnp.transpose(inputs, (1, 0, 2)).astype(jnp.float32)
    if h0 is None and c0 is None:
        h0 = jnp.broadcast_to(params["init_h"], (L, B, H))
        c0 = jnp.broadcast_to(params["init_c"], (L, B, H))
    hs, cs = [], []
    for l, lp in enumerate(params["layers"]):
        x, hn_l, cn_l = _lstm_layer_ref(x, lp["w_ih"], lp["w_hh"],
                                        lp["b_ih"], lp["b_hh"], h0[l], c0[l])
        hs.append(hn_l)
        cs.append(cn_l)
    return jnp.transpose(x, (1, 0, 2)), jnp.stack(hs), jnp.stack(cs)


if __name__ == "__main__":
    # Small shapes consistent with the module's forward; bidir=False is the
    # only self-consistent config; dropout applies only in train mode.
    batch, seq, embedding_dim, hidden_dim, n_layers = 2, 8, 16, 32, 2

    key = jax.random.PRNGKey(0)
    key, pkey, xkey, hkey, ckey = jax.random.split(key, 5)
    params = init_encoder_params(pkey, embedding_dim, hidden_dim, n_layers)
    inputs = jax.random.normal(xkey, (batch, seq, embedding_dim), jnp.float32)

    # Default (zero-parameter) initial state, f32 weights.
    outputs, hn, cn = encoder_forward(params, inputs)
    jax.block_until_ready((outputs, hn, cn))

    ref_out, ref_hn, ref_cn = encoder_forward_ref(params, inputs)
    assert outputs.shape == (batch, seq, hidden_dim)
    assert hn.shape == (n_layers, batch, hidden_dim)
    assert cn.shape == (n_layers, batch, hidden_dim)
    assert jnp.allclose(outputs, ref_out, atol=1e-4, rtol=1e-4)
    assert jnp.allclose(hn, ref_hn, atol=1e-4, rtol=1e-4)
    assert jnp.allclose(cn, ref_cn, atol=1e-4, rtol=1e-4)

    # Explicit (nonzero) h0/c0 path.
    h0 = 0.1 * jax.random.normal(hkey, (n_layers, batch, hidden_dim),
                                 jnp.float32)
    c0 = 0.1 * jax.random.normal(ckey, (n_layers, batch, hidden_dim),
                                 jnp.float32)
    out2, hn2, cn2 = encoder_forward(params, inputs, h0, c0)
    r_out2, r_hn2, r_cn2 = encoder_forward_ref(params, inputs, h0, c0)
    assert jnp.allclose(out2, r_out2, atol=1e-4, rtol=1e-4)
    assert jnp.allclose(hn2, r_hn2, atol=1e-4, rtol=1e-4)
    assert jnp.allclose(cn2, r_cn2, atol=1e-4, rtol=1e-4)

    # bf16 weights on the MXU (f32 accumulation / f32 recurrent state).
    out_bf16, _, _ = encoder_forward(params, inputs,
                                     param_dtype=jnp.bfloat16)
    jax.block_until_ready(out_bf16)
    assert float(jnp.max(jnp.abs(out_bf16 - ref_out))) < 5e-2

    print("KERNEL_OK")
</pallas_src>

<mosaic_0001>
module attributes {stable_mosaic.version = 11 : i64} {
  func.func @_encoder_lstm_kernel(%arg0: i32, %arg1: i32, %arg2: memref<8x8x128xf32, #tpu.memory_space<vmem>>, %arg3: memref<1x256x512xf32, #tpu.memory_space<vmem>>, %arg4: memref<1x1x512xf32, #tpu.memory_space<vmem>>, %arg5: memref<1x8x128xf32, #tpu.memory_space<vmem>>, %arg6: memref<1x8x128xf32, #tpu.memory_space<vmem>>, %arg7: memref<8x8x128xf32, #tpu.memory_space<vmem>>, %arg8: memref<1x8x128xf32, #tpu.memory_space<vmem>>, %arg9: memref<1x8x128xf32, #tpu.memory_space<vmem>>, %arg10: memref<8x8x512xf32, #tpu.memory_space<vmem>>) attributes {dimension_semantics = [#tpu.dimension_semantics<parallel>, #tpu.dimension_semantics<arbitrary>], iteration_bounds = array<i64: 1, 2>, scalar_prefetch = 0 : i64, scratch_operands = 1 : i64, tpu.core_type = #tpu.core_type<tc>, window_params = [{transform_indices = @transform_0, window_bounds = array<i64: 8, 8, 128>}, {transform_indices = @transform_1, window_bounds = array<i64: 1, 256, 512>}, {transform_indices = @transform_2, window_bounds = array<i64: 1, 1, 512>}, {transform_indices = @transform_3, window_bounds = array<i64: 1, 8, 128>}, {transform_indices = @transform_4, window_bounds = array<i64: 1, 8, 128>}, {transform_indices = @transform_5, window_bounds = array<i64: 8, 8, 128>}, {transform_indices = @transform_6, window_bounds = array<i64: 1, 8, 128>}, {transform_indices = @transform_7, window_bounds = array<i64: 1, 8, 128>}]} {
    %c0 = arith.constant 0 : index
    %c0_0 = arith.constant 0 : index
    %c0_1 = arith.constant 0 : index
    %0 = vector.load %arg4[%c0, %c0_0, %c0_1] : memref<1x1x512xf32, #tpu.memory_space<vmem>>, vector<1x1x512xf32>
    %1 = vector.shape_cast %0 : vector<1x1x512xf32> to vector<1x512xf32>
    %c0_i32 = arith.constant 0 : i32
    %2 = arith.cmpi eq, %arg1, %c0_i32 : i32
    %3 = arith.extui %2 : i1 to i32
    %c0_i32_2 = arith.constant 0 : i32
    %4 = arith.cmpi ne, %3, %c0_i32_2 : i32
    scf.if %4 {
      %c0_21 = arith.constant 0 : index
      %c0_22 = arith.constant 0 : index
      %c0_23 = arith.constant 0 : index
      %22 = vector.load %arg2[%c0_21, %c0_22, %c0_23] : memref<8x8x128xf32, #tpu.memory_space<vmem>>, vector<8x8x128xf32>
      %23 = vector.shape_cast %22 : vector<8x8x128xf32> to vector<64x128xf32>
      %c0_24 = arith.constant 0 : index
      %c0_25 = arith.constant 0 : index
      %c0_26 = arith.constant 0 : index
      %24 = vector.load %arg3[%c0_24, %c0_25, %c0_26] : memref<1x256x512xf32, #tpu.memory_space<vmem>>, vector<1x128x512xf32>
      %25 = vector.shape_cast %24 : vector<1x128x512xf32> to vector<128x512xf32>
      %cst = arith.constant dense<0.000000e+00> : vector<64x512xf32>
      %26 = tpu.matmul %23, %25, %cst {dimension_numbers = #tpu.dot_dimension_numbers<[1], [0], [0], [1], [0, 0, 1, 1], [], []>} : vector<64x128xf32>, vector<128x512xf32>, vector<64x512xf32> -> vector<64x512xf32>
      %27 = vector.broadcast %1 : vector<1x512xf32> to vector<64x512xf32>
      %28 = arith.addf %26, %27 : vector<64x512xf32>
      %29 = vector.shape_cast %28 : vector<64x512xf32> to vector<8x8x512xf32>
      %c0_27 = arith.constant 0 : index
      %c0_28 = arith.constant 0 : index
      %c0_29 = arith.constant 0 : index
      %30 = vector.load %arg10[%c0_27, %c0_28, %c0_29] : memref<8x8x512xf32, #tpu.memory_space<vmem>>, vector<8x8x512xf32>
      tpu.vector_store %arg10[%c0_27, %c0_28, %c0_29], %29 {strides = array<i32>} : memref<8x8x512xf32, #tpu.memory_space<vmem>>, vector<8x8x512xf32>,
    } else {
    }
    %c0_i32_3 = arith.constant 0 : i32
    %5 = arith.cmpi sgt, %arg1, %c0_i32_3 : i32
    %6 = arith.extui %5 : i1 to i32
    %c0_i32_4 = arith.constant 0 : i32
    %7 = arith.cmpi ne, %6, %c0_i32_4 : i32
    scf.if %7 {
      %c0_21 = arith.constant 0 : index
      %c0_22 = arith.constant 0 : index
      %c0_23 = arith.constant 0 : index
      %22 = vector.load %arg7[%c0_21, %c0_22, %c0_23] : memref<8x8x128xf32, #tpu.memory_space<vmem>>, vector<8x8x128xf32>
      %23 = vector.shape_cast %22 : vector<8x8x128xf32> to vector<64x128xf32>
      %c0_24 = arith.constant 0 : index
      %c0_25 = arith.constant 0 : index
      %c0_26 = arith.constant 0 : index
      %24 = vector.load %arg3[%c0_24, %c0_25, %c0_26] : memref<1x256x512xf32, #tpu.memory_space<vmem>>, vector<1x128x512xf32>
      %25 = vector.shape_cast %24 : vector<1x128x512xf32> to vector<128x512xf32>
      %cst = arith.constant dense<0.000000e+00> : vector<64x512xf32>
      %26 = tpu.matmul %23, %25, %cst {dimension_numbers = #tpu.dot_dimension_numbers<[1], [0], [0], [1], [0, 0, 1, 1], [], []>} : vector<64x128xf32>, vector<128x512xf32>, vector<64x512xf32> -> vector<64x512xf32>
      %27 = vector.broadcast %1 : vector<1x512xf32> to vector<64x512xf32>
      %28 = arith.addf %26, %27 : vector<64x512xf32>
      %29 = vector.shape_cast %28 : vector<64x512xf32> to vector<8x8x512xf32>
      %c0_27 = arith.constant 0 : index
      %c0_28 = arith.constant 0 : index
      %c0_29 = arith.constant 0 : index
      %30 = vector.load %arg10[%c0_27, %c0_28, %c0_29] : memref<8x8x512xf32, #tpu.memory_space<vmem>>, vector<8x8x512xf32>
      tpu.vector_store %arg10[%c0_27, %c0_28, %c0_29], %29 {strides = array<i32>} : memref<8x8x512xf32, #tpu.memory_space<vmem>>, vector<8x8x512xf32>,
    } else {
    }
    %c0_5 = arith.constant 0 : index
    %c128 = arith.constant 128 : index
    %c0_6 = arith.constant 0 : index
    %8 = vector.load %arg3[%c0_5, %c128, %c0_6] : memref<1x256x512xf32, #tpu.memory_space<vmem>>, vector<1x128x512xf32>
    %9 = vector.shape_cast %8 : vector<1x128x512xf32> to vector<128x512xf32>
    %c0_7 = arith.constant 0 : index
    %c0_8 = arith.constant 0 : index
    %c0_9 = arith.constant 0 : index
    %10 = vector.load %arg5[%c0_7, %c0_8, %c0_9] : memref<1x8x128xf32, #tpu.memory_space<vmem>>, vector<1x8x128xf32>
    %11 = vector.shape_cast %10 : vector<1x8x128xf32> to vector<8x128xf32>
    %c0_10 = arith.constant 0 : index
    %c0_11 = arith.constant 0 : index
    %c0_12 = arith.constant 0 : index
    %12 = vector.load %arg6[%c0_10, %c0_11, %c0_12] : memref<1x8x128xf32, #tpu.memory_space<vmem>>, vector<1x8x128xf32>
    %13 = vector.shape_cast %12 : vector<1x8x128xf32> to vector<8x128xf32>
    %c0_i32_13 = arith.constant 0 : i32
    %c8_i32 = arith.constant 8 : i32
    %14 = arith.addi %c0_i32_13, %c8_i32 : i32
    %c1_i32 = arith.constant 1 : i32
    %15:2 = scf.for %arg11 = %c0_i32_13 to %14 step %c1_i32 iter_args(%arg12 = %11, %arg13 = %13) -> (vector<8x128xf32>, vector<8x128xf32>)  : i32 {
      %22 = arith.index_cast %arg11 : i32 to index
      %c0_21 = arith.constant 0 : index
      %c0_22 = arith.constant 0 : index
      %23 = vector.load %arg10[%22, %c0_21, %c0_22] : memref<8x8x512xf32, #tpu.memory_space<vmem>>, vector<1x8x512xf32>
      %24 = vector.shape_cast %23 : vector<1x8x512xf32> to vector<8x512xf32>
      %cst = arith.constant dense<0.000000e+00> : vector<8x512xf32>
      %25 = tpu.matmul %arg12, %9, %cst {dimension_numbers = #tpu.dot_dimension_numbers<[1], [0], [0], [1], [0, 0, 1, 1], [], []>} : vector<8x128xf32>, vector<128x512xf32>, vector<8x512xf32> -> vector<8x512xf32>
      %26 = arith.addf %24, %25 : vector<8x512xf32>
      %27 = vector.extract_strided_slice %26 {offsets = [0, 0], sizes = [8, 128], strides = [1, 1]} : vector<8x512xf32> to vector<8x128xf32>
      %28 = arith.negf %27 : vector<8x128xf32>
      %29 = math.exp %28 : vector<8x128xf32>
      %cst_23 = arith.constant 1.000000e+00 : f32
      %30 = vector.broadcast %cst_23 : f32 to vector<8x128xf32>
      %31 = arith.addf %30, %29 : vector<8x128xf32>
      %32 = arith.divf %30, %31 : vector<8x128xf32>
      %33 = vector.extract_strided_slice %26 {offsets = [0, 128], sizes = [8, 128], strides = [1, 1]} : vector<8x512xf32> to vector<8x128xf32>
      %34 = arith.negf %33 : vector<8x128xf32>
      %35 = math.exp %34 : vector<8x128xf32>
      %cst_24 = arith.constant 1.000000e+00 : f32
      %36 = vector.broadcast %cst_24 : f32 to vector<8x128xf32>
      %37 = arith.addf %36, %35 : vector<8x128xf32>
      %38 = arith.divf %36, %37 : vector<8x128xf32>
      %39 = vector.extract_strided_slice %26 {offsets = [0, 256], sizes = [8, 128], strides = [1, 1]} : vector<8x512xf32> to vector<8x128xf32>
      %40 = math.tanh %39 : vector<8x128xf32>
      %41 = vector.extract_strided_slice %26 {offsets = [0, 384], sizes = [8, 128], strides = [1, 1]} : vector<8x512xf32> to vector<8x128xf32>
      %42 = arith.negf %41 : vector<8x128xf32>
      %43 = math.exp %42 : vector<8x128xf32>
      %cst_25 = arith.constant 1.000000e+00 : f32
      %44 = vector.broadcast %cst_25 : f32 to vector<8x128xf32>
      %45 = arith.addf %44, %43 : vector<8x128xf32>
      %46 = arith.divf %44, %45 : vector<8x128xf32>
      %47 = arith.mulf %38, %arg13 : vector<8x128xf32>
      %48 = arith.mulf %32, %40 : vector<8x128xf32>
      %49 = arith.addf %47, %48 : vector<8x128xf32>
      %50 = math.tanh %49 : vector<8x128xf32>
      %51 = arith.mulf %46, %50 : vector<8x128xf32>
      %52 = arith.index_cast %arg11 : i32 to index
      %c0_26 = arith.constant 0 : index
      %c0_27 = arith.constant 0 : index
      %53 = vector.load %arg7[%52, %c0_26, %c0_27] : memref<8x8x128xf32, #tpu.memory_space<vmem>>, vector<1x8x128xf32>
      %54 = vector.shape_cast %53 : vector<1x8x128xf32> to vector<8x128xf32>
      %55 = vector.shape_cast %51 : vector<8x128xf32> to vector<1x8x128xf32>
      tpu.vector_store %arg7[%52, %c0_26, %c0_27], %55 {strides = array<i32>} : memref<8x8x128xf32, #tpu.memory_space<vmem>>, vector<1x8x128xf32>,
      scf.yield %51, %49 : vector<8x128xf32>, vector<8x128xf32>
    }
    %c8_i32_14 = arith.constant 8 : i32
    %c0_15 = arith.constant 0 : index
    %c0_16 = arith.constant 0 : index
    %c0_17 = arith.constant 0 : index
    %16 = vector.load %arg8[%c0_15, %c0_16, %c0_17] : memref<1x8x128xf32, #tpu.memory_space<vmem>>, vector<1x8x128xf32>
    %17 = vector.shape_cast %16 : vector<1x8x128xf32> to vector<8x128xf32>
    %18 = vector.shape_cast %15#0 : vector<8x128xf32> to vector<1x8x128xf32>
    tpu.vector_store %arg8[%c0_15, %c0_16, %c0_17], %18 {strides = array<i32>} : memref<1x8x128xf32, #tpu.memory_space<vmem>>, vector<1x8x128xf32>,
    %c0_18 = arith.constant 0 : index
    %c0_19 = arith.constant 0 : index
    %c0_20 = arith.constant 0 : index
    %19 = vector.load %arg9[%c0_18, %c0_19, %c0_20] : memref<1x8x128xf32, #tpu.memory_space<vmem>>, vector<1x8x128xf32>
    %20 = vector.shape_cast %19 : vector<1x8x128xf32> to vector<8x128xf32>
    %21 = vector.shape_cast %15#1 : vector<8x128xf32> to vector<1x8x128xf32>
    tpu.vector_store %arg9[%c0_18, %c0_19, %c0_20], %21 {strides = array<i32>} : memref<1x8x128xf32, #tpu.memory_space<vmem>>, vector<1x8x128xf32>,
    return
  }
  func.func @transform_0(%arg0: i32, %arg1: i32) -> (i32, i32, i32) {
    %c0_i32 = arith.constant 0 : i32
    %c0_i32_0 = arith.constant 0 : i32
    %c0_i32_1 = arith.constant 0 : i32
    return %c0_i32, %arg0, %c0_i32_0 : i32, i32, i32
  }
  func.func @transform_1(%arg0: i32, %arg1: i32) -> (i32, i32, i32) {
    %c0_i32 = arith.constant 0 : i32
    %c0_i32_0 = arith.constant 0 : i32
    %c0_i32_1 = arith.constant 0 : i32
    return %arg1, %c0_i32, %c0_i32_0 : i32, i32, i32
  }
  func.func @transform_2(%arg0: i32, %arg1: i32) -> (i32, i32, i32) {
    %c0_i32 = arith.constant 0 : i32
    %c0_i32_0 = arith.constant 0 : i32
    %c0_i32_1 = arith.constant 0 : i32
    return %arg1, %c0_i32, %c0_i32_0 : i32, i32, i32
  }
  func.func @transform_3(%arg0: i32, %arg1: i32) -> (i32, i32, i32) {
    %c0_i32 = arith.constant 0 : i32
    %c0_i32_0 = arith.constant 0 : i32
    return %arg1, %arg0, %c0_i32 : i32, i32, i32
  }
  func.func @transform_4(%arg0: i32, %arg1: i32) -> (i32, i32, i32) {
    %c0_i32 = arith.constant 0 : i32
    %c0_i32_0 = arith.constant 0 : i32
    return %arg1, %arg0, %c0_i32 : i32, i32, i32
  }
  func.func @transform_5(%arg0: i32, %arg1: i32) -> (i32, i32, i32) {
    %c0_i32 = arith.constant 0 : i32
    %c0_i32_0 = arith.constant 0 : i32
    %c0_i32_1 = arith.constant 0 : i32
    return %c0_i32, %arg0, %c0_i32_0 : i32, i32, i32
  }
  func.func @transform_6(%arg0: i32, %arg1: i32) -> (i32, i32, i32) {
    %c0_i32 = arith.constant 0 : i32
    %c0_i32_0 = arith.constant 0 : i32
    return %arg1, %arg0, %c0_i32 : i32, i32, i32
  }
  func.func @transform_7(%arg0: i32, %arg1: i32) -> (i32, i32, i32) {
    %c0_i32 = arith.constant 0 : i32
    %c0_i32_0 = arith.constant 0 : i32
    return %arg1, %arg0, %c0_i32 : i32, i32, i32
  }
}

</mosaic_0001>

<bundles_post_ra>
// kernel: tpu_custom_call.1
= control target key start
LH: loop header
LB: loop body
LE: loop exit
PB: predicated region body
PF: predicated region fallthrough
CT: control target
= control target key end

     0   :  { %s3044_s0 = inlined_call_operand.hbm [shape: f32[8,8,128], index: 0, kind: input, shape index: {}]   ;;  %s3045_s1 = inlined_call_operand.hbm [shape: f32[2,256,512], index: 1, kind: input, shape index: {}]   ;;  %s3046_s2 = inlined_call_operand.hbm [shape: f32[2,1,512], index: 2, kind: input, shape index: {}]   ;;  %s3047_s3 = inlined_call_operand.hbm [shape: f32[2,8,128], index: 3, kind: input, shape index: {}]   ;;  %s3048_s4 = inlined_call_operand.hbm [shape: f32[2,8,128], index: 4, kind: input, shape index: {}]   ;;  %s3049_s5 = inlined_call_operand.hbm [shape: f32[8,8,128], index: 5, kind: output, shape index: {0}]   ;;  %s3050_s6 = inlined_call_operand.hbm [shape: f32[2,8,128], index: 6, kind: output, shape index: {1}]   ;;  %s3051_s7 = inlined_call_operand.hbm [shape: f32[2,8,128], index: 7, kind: output, shape index: {2}]  }
   0x1   :  { %3060 = sst [smem:[#allocation42_spill]] %s3045_s1 }
   0x2   :  { %3061 = sst [smem:[#allocation43_spill]] %s3047_s3 }
   0x3   :  { %3062 = sst [smem:[#allocation44_spill]] %s3048_s4 }
   0x4   :  { %3063 = sst [smem:[#allocation45_spill]] %s3049_s5 }
   0x5   :  { %3064 = sst [smem:[#allocation46_spill]] %s3051_s7 }
   0x6   :  { %13 = vsyncpa [#allocation4], 0 }
   0x7   :  { %14 = vsyncpa [#allocation7], 0 }
   0x8   :  { %16 = vsyncpa [#allocation7 + $0x1], 0 }
   0x9   :  { %17 = vsyncpa [#allocation10], 0 }
   0xa   :  { %19 = vsyncpa [#allocation10 + $0x1], 0 }
   0xb   :  { %20 = vsyncpa [#allocation5], 0 }
   0xc   :  { %21 = vsyncpa [#allocation14], 0 }
   0xd   :  { %23 = vsyncpa [#allocation14 + $0x1], 0  ;;  %s2246_s24 = smov 0   ;;  %s2248_s25 = smov 0  }
   0xe   :  { %s2250_s26 = smov 0   ;;  %s2252_s27 = smov 0  }
   0xf   :  { %s2254_s28 = smov 0   ;;  %s2256_s29 = smov 0  }
  0x10 LB: > { %s38_s30 = sadd.s32 1, %s2171_s28  ;;  %s74_s8 = sadd.s32 1, %s2163_s26  ;;  %s2175_s29 = sphi %s2256_s29, %s29_s29   ;;  %s2171_s28 = sphi %s2254_s28, %s3137_s28   ;;  %s2167_s27 = sphi %s2252_s27, %s3136_s27   ;;  %s2163_s26 = sphi %s2250_s26, %s3135_s26   ;;  %s2159_s25 = sphi %s2248_s25, %s3134_s25   ;;  %s2155_s24 = sphi %s2246_s24, %s3133_s24  }
  0x11   : > { %p39_p0 = scmp.ge.s32.totalorder %s38_s30, 2  ;;  %p81_p1 = scmp.ne.s32.totalorder %s2163_s26, %s2159_s25 }
  0x12   : > { %p82_p2 = scmp.eq.s32.totalorder %s2175_s29, 0  ;;  %p1779_p5 = scmp.lt.s32.totalorder %s2175_s29, 2 }
  0x13   : > { %s3139_s30 = smov (%p39_p0, %s38_s30), 0  ;;  %s3052_s10 = sand.u32 1, %s2175_s29  }
  0x14   : > { %3065 = sst [smem:[#allocation21_spill]] %s3139_s30  ;;  %p83_p4 = por %p82_p2, %p81_p1 }
  0x15   : > { %s71_s9 = ssub.s32 %s2171_s28, %s3139_s30  ;;  %s2292_s11 = sand.u32 1, %s2163_s26  }
  0x16   : > { %p72_p6 = scmp.eq.s32.totalorder %s71_s9, 0  ;;  %s1731_s12 = sshll.u32 %s2171_s28, 14 }
  0x17   : > { %s1697_s14 = sshll.u32 %s2292_s11, 10  ;;  %s3067_s1 = sld [smem:[#allocation42_spill]] }
  0x18   : > { %s2296_s13 = scalar_select %p72_p6, %s2163_s26, %s74_s8  }
  0x19   : > { %p2302_p7 = pnand %p1779_p5, %p83_p4  ;;  %s294_s19 = scalar_lea.vmem [#allocation6], %s1697_s14 }
  0x1a   : > { %3066 = sst [smem:[#allocation22_spill]] %s2296_s13  ;;  %s301_s20 = sshll.u32 %s294_s19, 4  ;;  %s302_s20 = int_to_ptr.vmem [resolvable:$true] %s301_s20 }
  0x1b   : > { %s2308_s21 = scalar_lea.sflag [#allocation7], %s3052_s10  ;;  %p3058_p8 = pneg %p2302_p7 }
  0x1c   : > { %s1896_s22 = scalar_lea.vmem %s302_s20, 16384  ;;  %s2189_s23 = smov [#allocation6]  }
  0x1d   : > { %s300_s17 = scalar_lea.hbm %s3067_s1, %s1731_s12  ;;  %p1897_p9 = scmp.ne.s32.totalorder %s302_s20, %s1896_s22 }
  0x1e   : > { %s1901_s8 = sshll.u32 %s2189_s23, 4  ;;  %s1902_s8 = int_to_ptr.vmem [resolvable:$false] %s1901_s8 }
  0x1f   : > { %p1899_p10 = pnand %p1897_p9, %p3058_p8  ;;  %s1903_s9 = scalar_lea.vmem %s1902_s8, 32768 }
  0x20   : > { %p1904_p12 = scmp.lt.s32.totalorder %s302_s20, %s1902_s8  ;;  %p1905_p13 = scmp.lt.s32.totalorder %s1903_s9, %s1896_s22 }
  0x21   : > { %p1900_p11 = pneg %p1899_p10 }
  0x22   : > { %p1906_p0 = por %p1905_p13, %p1904_p12 }
  0x24   : > { %p1907_p2 = pnand %p1906_p0, %p1900_p11 }
  0x26   : > { %1910 = shalt.err (!%p1907_p2)
}
  0x27   : > { %s2190_s12 = smov 512   ;;  %s2191_s14 = smov 32  }
  0x28   : > { %1761 = dma.hbm_to_vmem [thread:$0]  (!%p2302_p7), %s300_s17, 16384, %s302_s20, %s2308_s21, %s2190_s12, %s2190_s12, %s2191_s14  }
  0x29   : > { %s1703_s15 = sshll.u32 %s2292_s11, 3  ;;  %s1704_s16 = sshll.u32 %s2171_s28, 7 }
  0x2a   : > { %s3069_s3 = sld [smem:[#allocation43_spill]]  ;;  %s334_s8 = scalar_lea.vmem [#allocation9], %s1703_s15 }
  0x2b   : > { %s342_s9 = sshll.u32 %s334_s8, 4  ;;  %s3070_s4 = sld [smem:[#allocation44_spill]]  ;;  %s343_s9 = int_to_ptr.vmem [resolvable:$true] %s342_s9 }
  0x2c   : > { %s3071_s13 = sand.u32 1, %s2175_s29   ;;  %s1924_s7 = scalar_lea.vmem %s343_s9, 128 }
  0x2d   : > { %s2332_s5 = scalar_lea.sflag [#allocation10], %s3071_s13  ;;  %p1925_p4 = scmp.ne.s32.totalorder %s343_s9, %s1924_s7 }
  0x2e   : > { %s2192_s17 = smov [#allocation9]  }
  0x2f   : > { %p1927_p5 = pnand %p1925_p4, %p3058_p8  ;;  %s1929_s20 = sshll.u32 %s2192_s17, 4  ;;  %s1930_s20 = int_to_ptr.vmem [resolvable:$false] %s1929_s20 }
  0x30   : > { %s340_s22 = scalar_lea.hbm %s3069_s3, %s1704_s16  ;;  %s1931_s12 = scalar_lea.vmem %s1930_s20, 256 }
  0x31   : > { %s2328_s30 = scalar_lea.hbm %s3070_s4, %s1704_s16  ;;  %p1928_p6 = pneg %p1927_p5 }
  0x32   : > { %p1932_p9 = scmp.lt.s32.totalorder %s343_s9, %s1930_s20  ;;  %p1933_p10 = scmp.lt.s32.totalorder %s1931_s12, %s1924_s7 }
  0x34   : > { %p1934_p11 = por %p1933_p10, %p1932_p9 }
  0x36   : > { %p1935_p12 = pnand %p1934_p11, %p1928_p6 }
  0x38   : > { %1938 = shalt.err (!%p1935_p12)
}
  0x39   : > { %1767 = dma.hbm_to_vmem [thread:$0]  (!%p2302_p7), %s340_s22, 128, %s343_s9, %s2332_s5  }
  0x3a   : > { %s2341_s1 = sadd.s32 4294967295, %s2175_s29   ;;  %s3055_s7 = sadd.s32 4294967294, %s2175_s29  }
  0x3b   : > { %p87_p13 = scmp.ne.s32.totalorder %s2159_s25, %s2155_s24  ;;  %p3057_p0 = scmp.eq.s32.totalorder %s2341_s1, 0 }
  0x3c   : > { %p3056_p2 = scmp.eq.s32.totalorder %s2341_s1, 1  ;;  %p227_p4 = scmp.eq.s32.totalorder %s3055_s7, 1 }
  0x3d   : > { %p2352_p5 = por %p3057_p0, %p87_p13  ;;  %p1694_p6 = scmp.ge.s32.totalorder %s2175_s29, 1 }
  0x3e   : > { %p2362_p9 = por %p3056_p2, %p81_p1  ;;  %p2366_p10 = por %p227_p4, %p87_p13 }
  0x3f   : > { %p262_p11 = scmp.lt.s32.totalorder %s2175_s29, 3  ;;  %s2193_s16 = smov [#allocation3]  }
  0x40   : > { %s3073_s13 = scalar_select %p2362_p9, 1, 0 }
  0x41   : > { %s3074_s24 = scalar_select %p2366_p10, 1, 0 }
  0x42   : > { %p2371_p12 = pnand %p1694_p6, %p262_p11  ;;  %s276_s19 = sshll.u32 %s2193_s16, 4  ;;  %s277_s19 = int_to_ptr.vmem [resolvable:$true] %s276_s19 }
  0x43   : > { %s1700_s23 = sshll.u32 %s2292_s11, 2  ;;  %s1732_s22 = sshll.u32 %s2171_s28, 6 }
  0x44   : > { %p1754_p3 = pneg %p2371_p12  ;;  %s2388_s20 = scalar_lea.hbm %s3046_s2, %s1732_s22 }
  0x45   : > { %s315_s12 = scalar_lea.vmem [#allocation8], %s1700_s23  ;;  %s2392_s16 = scalar_lea.vmem [#allocation11], %s1703_s15 }
  0x46   : > { %p2381_p1 = pnand %p1754_p3, %p3057_p0  ;;  %s323_s7 = sshll.u32 %s315_s12, 4  ;;  %s324_s7 = int_to_ptr.vmem [resolvable:$true] %s323_s7 }
  0x47   : > { %s361_s3 = sshll.u32 %s2392_s16, 4  ;;  %s1950_s4 = scalar_lea.vmem %s277_s19, 1024  ;;  %s362_s3 = int_to_ptr.vmem [resolvable:$true] %s361_s3 }
  0x48   : > { %p1941_p13 = pneg %p2381_p1  ;;  %p1951_p3 = scmp.ne.s32.totalorder %s277_s19, %s1950_s4 }
  0x49   : > { %p1958_p11 = scmp.lt.s32.totalorder %s277_s19, %s277_s19  ;;  %p1959_p2 = scmp.lt.s32.totalorder %s1950_s4, %s1950_s4 }
  0x4a   : > { %p1953_p4 = pnand %p1951_p3, %p1941_p13 }
  0x4b   : > { %p1960_p0 = por %p1959_p2, %p1958_p11 }
  0x4c   : > { %p1954_p6 = pneg %p1953_p4 }
  0x4e   : > { %p1961_p8 = pnand %p1960_p0, %p1954_p6 }
  0x50   : > { %1964 = shalt.err (!%p1961_p8)
}
  0x51   : > { %s2194_s22 = smov 128   ;;  %s2195_s11 = smov 8  }
  0x52   : > { %1757 = dma.hbm_to_vmem [thread:$0]  (!%p2381_p1), %s3044_s0, 1024, %s277_s19, [#allocation4], %s2194_s22, %s2194_s22, %s2195_s11  }
  0x53   : > { %s1978_s9 = scalar_lea.vmem %s324_s7, 64  ;;  %p3077_p9 = pneg %p2302_p7 }
  0x54   : > { %p1979_p10 = scmp.ne.s32.totalorder %s324_s7, %s1978_s9  ;;  %s2196_s17 = smov [#allocation8]  }
  0x55   : > { %s1983_s4 = sshll.u32 %s2196_s17, 4  ;;  %s1984_s4 = int_to_ptr.vmem [resolvable:$false] %s1983_s4 }
  0x56   : > { %p1981_p13 = pnand %p1979_p10, %p3077_p9  ;;  %s1985_s12 = scalar_lea.vmem %s1984_s4, 128 }
  0x57   : > { %p1986_p8 = scmp.lt.s32.totalorder %s324_s7, %s1984_s4  ;;  %p1987_p0 = scmp.lt.s32.totalorder %s1985_s12, %s1978_s9 }
  0x58   : > { %p1982_p3 = pneg %p1981_p13 }
  0x59   : > { %p1988_p2 = por %p1987_p0, %p1986_p8 }
  0x5b   : > { %p1989_p4 = pnand %p1988_p2, %p1982_p3 }
  0x5d   : > { %1992 = shalt.err (!%p1989_p4)
}
  0x5e   : > { %1764 = dma.hbm_to_vmem [thread:$0]  (!%p2302_p7), %s2388_s20, 64, %s324_s7, %s2308_s21  }
  0x5f   : > { %s2006_s19 = scalar_lea.vmem %s362_s3, 128  ;;  %p3078_p10 = pneg %p2302_p7 }
  0x60   : > { %p2007_p9 = scmp.ne.s32.totalorder %s362_s3, %s2006_s19  ;;  %s2197_s8 = smov [#allocation11]  }
  0x61   : > { %s2011_s22 = sshll.u32 %s2197_s8, 4  ;;  %s2012_s22 = int_to_ptr.vmem [resolvable:$false] %s2011_s22 }
  0x62   : > { %p2009_p1 = pnand %p2007_p9, %p3078_p10  ;;  %s2013_s11 = scalar_lea.vmem %s2012_s22, 256 }
  0x63   : > { %p2014_p11 = scmp.lt.s32.totalorder %s362_s3, %s2012_s22  ;;  %p2015_p13 = scmp.lt.s32.totalorder %s2013_s11, %s2006_s19 }
  0x64   : > { %p2010_p6 = pneg %p2009_p1 }
  0x65   : > { %p2016_p3 = por %p2015_p13, %p2014_p11 }
  0x67   : > { %p2017_p8 = pnand %p2016_p3, %p2010_p6 }
  0x69   : > { %2020 = shalt.err (!%p2017_p8)
}
  0x6a   : > { %1770 = dma.hbm_to_vmem [thread:$0]  (!%p2302_p7), %s2328_s30, 128, %s362_s3, %s2332_s5  }
  0x6b   : > { %370 = sbr.rel (%p2371_p12) target bundleno = 1018 (0x3fa), region = 40 }
  0x70   : > { %p3079_p0 = scmp.eq.s32.totalorder %s2341_s1, 0 }
  0x72   : > { %2134 = dma.done.wait (%p3079_p0), [#allocation4], 1024   ;;  %p3080_p2 = pmov %p3079_p0 }
  0x73   : > { %s2425_s21 = sand.u32 1, %s2341_s1   ;;  %s378_s7 = sand.u32 1, %s2159_s25  }
  0x74   : > { %2136 = vsyncadd (%p3080_p2), [#allocation4], 4294966272  ;;  %s1709_s18 = sshll.u32 %s378_s7, 10  ;;  %s377_s20 = scalar_lea.sflag [#allocation7], %s2425_s21 }
  0x75   : > { %s2429_s16 = scalar_lea.vmem [#allocation6], %s1709_s18 }
  0x76   : > { %2138 = dma.done.wait (%p2352_p5), %s377_s20, 16448  }
  0x77   : > { %2140 = vsyncadd (%p2352_p5), %s377_s20, 4294950848  ;;  %s1710_s3 = sshll.u32 %s378_s7, 2  ;;  %s2435_s5 = sshll.u32 %s378_s7, 3 }
  0x78   : > { %s389_s30 = scalar_lea.vmem [#allocation8], %s1710_s3  ;;  %s395_s14 = scalar_lea.sflag [#allocation10], %s2425_s21 }
  0x79   : > { %s398_s15 = scalar_lea.vmem [#allocation9], %s2435_s5 }
  0x7a   : > { %2142 = dma.done.wait (%p2352_p5), %s395_s14, 256  }
  0x7b   : > { %2144 = vsyncadd (%p2352_p5), %s395_s14, 4294967040  ;;  %v2443_v0 = vld [vmem:[%s389_s30] sm:$0xf]  ;;  %s407_s23 = scalar_lea.vmem [#allocation11], %s2435_s5  ;;  %s450_s9 = scalar_lea.vmem [#allocation13], %s2435_s5 }
  0x7c   : > { %s457_s17 = scalar_lea.vmem [#allocation15], %s2435_s5  ;;  %p1715_p7 = scmp.ne.s32.totalorder %s2167_s27, 0 }
  0x7e   : > { %462 = sbr.rel (%p1715_p7) target bundleno = 391 (0x187), region = 64 }
  0x83   : > { %v532_v1 = vld [vmem:[%s2429_s16 + $0x1e8] sm:$0xff]  ;;  %v534_v2 = vld [vmem:[%s2429_s16 + $0x1f8] sm:$0xff]  ;;  %v531_v3 = vld [vmem:[%s2429_s16 + $0x1e0] sm:$0xff] }
  0x84   : > { %556 = vmatprep.subr.mxu0 %v532_v1  ;;  %669 = vmatprep.subr.mxu1 %v534_v2  ;;  %v533_v4 = vld [vmem:[%s2429_s16 + $0x1f0] sm:$0xff]  ;;  %v528_v5 = vld [vmem:[%s2429_s16 + $0x1c8] sm:$0xff]  ;;  %v530_v6 = vld [vmem:[%s2429_s16 + $0x1d8] sm:$0xff] }
  0x85   : > { %557 = vmatpush1.msra.mxu0 %v531_v3  ;;  %670 = vmatpush1.msra.mxu1 %v533_v4  ;;  %v527_v7 = vld [vmem:[%s2429_s16 + $0x1c0] sm:$0xff]  ;;  %v529_v8 = vld [vmem:[%s2429_s16 + $0x1d0] sm:$0xff]  ;;  %v524_v9 = vld [vmem:[%s2429_s16 + $0x1a8] sm:$0xff]  ;;  %v2198_v3 = vmov 0.0  }
  0x86   : > { %558 = vmatprep.subr.mxu0 %v528_v5  ;;  %671 = vmatprep.subr.mxu1 %v530_v6  ;;  %v526_v10 = vld [vmem:[%s2429_s16 + $0x1b8] sm:$0xff]  ;;  %v523_v11 = vld [vmem:[%s2429_s16 + $0x1a0] sm:$0xff]  ;;  %v525_v12 = vld [vmem:[%s2429_s16 + $0x1b0] sm:$0xff] }
  0x87   : > { %559 = vmatpush1.msra.mxu0 %v527_v7  ;;  %672 = vmatpush1.msra.mxu1 %v529_v8  ;;  %v520_v13 = vld [vmem:[%s2429_s16 + $0x188] sm:$0xff]  ;;  %v522_v14 = vld [vmem:[%s2429_s16 + $0x198] sm:$0xff]  ;;  %v519_v15 = vld [vmem:[%s2429_s16 + $0x180] sm:$0xff] }
  0x88   : > { %560 = vmatprep.subr.mxu0 %v524_v9  ;;  %673 = vmatprep.subr.mxu1 %v526_v10  ;;  %v521_v16 = vld [vmem:[%s2429_s16 + $0x190] sm:$0xff]  ;;  %v516_v17 = vld [vmem:[%s2429_s16 + $0x168] sm:$0xff]  ;;  %v518_v18 = vld [vmem:[%s2429_s16 + $0x178] sm:$0xff] }
  0x89   : > { %561 = vmatpush1.msra.mxu0 %v523_v11  ;;  %674 = vmatpush1.msra.mxu1 %v525_v12  ;;  %v515_v19 = vld [vmem:[%s2429_s16 + $0x160] sm:$0xff]  ;;  %v517_v20 = vld [vmem:[%s2429_s16 + $0x170] sm:$0xff]  ;;  %v512_v21 = vld [vmem:[%s2429_s16 + $0x148] sm:$0xff]  ;;  %v536_v11 = vlaneseq }
  0x8a   : > { %562 = vmatprep.subr.mxu0 %v520_v13  ;;  %675 = vmatprep.subr.mxu1 %v522_v14  ;;  %v514_v22 = vld [vmem:[%s2429_s16 + $0x158] sm:$0xff]  ;;  %v511_v23 = vld [vmem:[%s2429_s16 + $0x140] sm:$0xff]  ;;  %v513_v24 = vld [vmem:[%s2429_s16 + $0x150] sm:$0xff] }
  0x8b   : > { %563 = vmatpush1.msra.mxu0 %v519_v15  ;;  %676 = vmatpush1.msra.mxu1 %v521_v16  ;;  %v508_v25 = vld [vmem:[%s2429_s16 + $0x128] sm:$0xff]  ;;  %v510_v26 = vld [vmem:[%s2429_s16 + $0x138] sm:$0xff]  ;;  %v507_v27 = vld [vmem:[%s2429_s16 + $0x120] sm:$0xff]  ;;  %v537_v12 = vshrl.u32 %v536_v11, 7 }
  0x8c   : > { %564 = vmatprep.subr.mxu0 %v516_v17  ;;  %677 = vmatprep.subr.mxu1 %v518_v18  ;;  %v509_v28 = vld [vmem:[%s2429_s16 + $0x130] sm:$0xff]  ;;  %v504_v29 = vld [vmem:[%s2429_s16 + $0x108] sm:$0xff]  ;;  %v506_v30 = vld [vmem:[%s2429_s16 + $0x118] sm:$0xff] }
  0x8d   : > { %565 = vmatpush1.msra.mxu0 %v515_v19  ;;  %678 = vmatpush1.msra.mxu1 %v517_v20  ;;  %v503_v31 = vld [vmem:[%s2429_s16 + $0x100] sm:$0xff]  ;;  %v505_v32 = vld [vmem:[%s2429_s16 + $0x110] sm:$0xff]  ;;  %v500_v33 = vld [vmem:[%s2429_s16 + $0xe8] sm:$0xff]  ;;  %v538_v13 = vsub.s32 0, %v537_v12  ;;  %v546_v14 = vsub.s32 2, %v537_v12  ;;  %v542_v15 = vsub.s32 1, %v537_v12 }
  0x8e   : > { %566 = vmatprep.subr.mxu0 %v512_v21  ;;  %679 = vmatprep.subr.mxu1 %v514_v22  ;;  %v502_v34 = vld [vmem:[%s2429_s16 + $0xf8] sm:$0xff]  ;;  %v499_v35 = vld [vmem:[%s2429_s16 + $0xe0] sm:$0xff]  ;;  %v501_v36 = vld [vmem:[%s2429_s16 + $0xf0] sm:$0xff]  ;;  %v550_v16 = vsub.s32 3, %v537_v12 }
  0x8f   : > { %567 = vmatpush1.msra.mxu0 %v511_v23  ;;  %680 = vmatpush1.msra.mxu1 %v513_v24  ;;  %v496_v37 = vld [vmem:[%s2429_s16 + $0xc8] sm:$0xff]  ;;  %v498_v38 = vld [vmem:[%s2429_s16 + $0xd8] sm:$0xff]  ;;  %v495_v39 = vld [vmem:[%s2429_s16 + $0xc0] sm:$0xff]  ;;  %v2514_v17 = vrot.slane %v2443_v0, %v538_v13  ;;  %v2517_v18 = vrot.slane %v2443_v0, %v546_v14  ;;  %v2520_v19 = vrot.slane %v2443_v0, %v542_v15 }
  0x90   : > { %568 = vmatprep.subr.mxu0 %v508_v25  ;;  %681 = vmatprep.subr.mxu1 %v510_v26  ;;  %v497_v40 = vld [vmem:[%s2429_s16 + $0xd0] sm:$0xff]  ;;  %v492_v41 = vld [vmem:[%s2429_s16 + $0xa8] sm:$0xff]  ;;  %v494_v42 = vld [vmem:[%s2429_s16 + $0xb8] sm:$0xff]  ;;  %v2523_v20 = vrot.slane %v2443_v0, %v550_v16 }
  0x91   : > { %569 = vmatpush1.msra.mxu0 %v507_v27  ;;  %682 = vmatpush1.msra.mxu1 %v509_v28  ;;  %v491_v43 = vld [vmem:[%s2429_s16 + $0xa0] sm:$0xff]  ;;  %v493_v44 = vld [vmem:[%s2429_s16 + $0xb0] sm:$0xff]  ;;  %v488_v45 = vld [vmem:[%s2429_s16 + $0x88] sm:$0xff] }
  0x92   : > { %570 = vmatprep.subr.mxu0 %v504_v29  ;;  %683 = vmatprep.subr.mxu1 %v506_v30  ;;  %v490_v46 = vld [vmem:[%s2429_s16 + $0x98] sm:$0xff]  ;;  %v487_v47 = vld [vmem:[%s2429_s16 + $0x80] sm:$0xff]  ;;  %v489_v48 = vld [vmem:[%s2429_s16 + $0x90] sm:$0xff] }
  0x93   : > { %571 = vmatpush1.msra.mxu0 %v503_v31  ;;  %684 = vmatpush1.msra.mxu1 %v505_v32  ;;  %v484_v49 = vld [vmem:[%s2429_s16 + $0x68] sm:$0xff]  ;;  %v486_v50 = vld [vmem:[%s2429_s16 + $0x78] sm:$0xff]  ;;  %v483_v51 = vld [vmem:[%s2429_s16 + $0x60] sm:$0xff] }
  0x94   : > { %572 = vmatprep.subr.mxu0 %v500_v33  ;;  %685 = vmatprep.subr.mxu1 %v502_v34  ;;  %v485_v52 = vld [vmem:[%s2429_s16 + $0x70] sm:$0xff]  ;;  %v480_v53 = vld [vmem:[%s2429_s16 + $0x48] sm:$0xff]  ;;  %v482_v54 = vld [vmem:[%s2429_s16 + $0x58] sm:$0xff] }
  0x95   : > { %573 = vmatpush1.msra.mxu0 %v499_v35  ;;  %686 = vmatpush1.msra.mxu1 %v501_v36  ;;  %v479_v55 = vld [vmem:[%s2429_s16 + $0x40] sm:$0xff]  ;;  %v481_v56 = vld [vmem:[%s2429_s16 + $0x50] sm:$0xff]  ;;  %v476_v57 = vld [vmem:[%s2429_s16 + $0x28] sm:$0xff] }
  0x96   : > { %574 = vmatprep.subr.mxu0 %v496_v37  ;;  %687 = vmatprep.subr.mxu1 %v498_v38  ;;  %v478_v58 = vld [vmem:[%s2429_s16 + $0x38] sm:$0xff]  ;;  %v475_v59 = vld [vmem:[%s2429_s16 + $0x20] sm:$0xff]  ;;  %v477_v60 = vld [vmem:[%s2429_s16 + $0x30] sm:$0xff] }
  0x97   : > { %575 = vmatpush1.msra.mxu0 %v495_v39  ;;  %688 = vmatpush1.msra.mxu1 %v497_v40  ;;  %v472_v61 = vld [vmem:[%s2429_s16 + $0x8] sm:$0xff]  ;;  %v474_v62 = vld [vmem:[%s2429_s16 + $0x18] sm:$0xff]  ;;  %v471_v63 = vld [vmem:[%s2429_s16] sm:$0xff] }
  0x98   : > { %576 = vmatprep.subr.mxu0 %v492_v41  ;;  %689 = vmatprep.subr.mxu1 %v494_v42  ;;  %v473_v1 = vld [vmem:[%s2429_s16 + $0x10] sm:$0xff]  ;;  %v463_v2 = vld [vmem:[#allocation3] sm:$0xff]  ;;  %v464_v4 = vld [vmem:[#allocation3 + $0x8] sm:$0xff] }
  0x99   : > { %577 = vmatpush1.msra.mxu0 %v491_v43  ;;  %690 = vmatpush1.msra.mxu1 %v493_v44  ;;  %v465_v5 = vld [vmem:[#allocation3 + $0x10] sm:$0xff]  ;;  %v466_v6 = vld [vmem:[#allocation3 + $0x18] sm:$0xff]  ;;  %v467_v7 = vld [vmem:[#allocation3 + $0x20] sm:$0xff] }
  0x9a   : > { %578 = vmatprep.subr.mxu0 %v488_v45  ;;  %691 = vmatprep.subr.mxu1 %v490_v46  ;;  %v468_v8 = vld [vmem:[#allocation3 + $0x28] sm:$0xff]  ;;  %v469_v9 = vld [vmem:[#allocation3 + $0x30] sm:$0xff]  ;;  %v470_v10 = vld [vmem:[#allocation3 + $0x38] sm:$0xff] }
  0x9b   : > { %579 = vmatpush1.msra.mxu0 %v487_v47  ;;  %692 = vmatpush1.msra.mxu1 %v489_v48 }
  0x9c   : > { %580 = vmatprep.subr.mxu0 %v484_v49  ;;  %693 = vmatprep.subr.mxu1 %v486_v50 }
  0x9d   : > { %581 = vmatpush1.msra.mxu0 %v483_v51  ;;  %694 = vmatpush1.msra.mxu1 %v485_v52 }
  0x9e   : > { %582 = vmatprep.subr.mxu0 %v480_v53  ;;  %695 = vmatprep.subr.mxu1 %v482_v54 }
  0x9f   : > { %583 = vmatpush1.msra.mxu0 %v479_v55  ;;  %696 = vmatpush1.msra.mxu1 %v481_v56 }
  0xa0   : > { %584 = vmatprep.subr.mxu0 %v476_v57  ;;  %697 = vmatprep.subr.mxu1 %v478_v58 }
  0xa1   : > { %585 = vmatpush1.msra.mxu0 %v475_v59  ;;  %698 = vmatpush1.msra.mxu1 %v477_v60 }
  0xa2   : > { %586 = vmatprep.subr.mxu0 %v472_v61  ;;  %699 = vmatprep.subr.mxu1 %v474_v62 }
  0xa3   : > { %587 = vmatpush1.msra.mxu0 %v471_v63  ;;  %620 = vmatprep.mubr.f32.mxu0 %v2198_v3 }
  0xa4   : > { %700 = vmatpush1.msra.mxu1 %v473_v1  ;;  %733 = vmatprep.mubr.f32.mxu1 %v2198_v3 }
  0xa5   : > { %621 = vmatmul.mubr.f32.vlgmr.msra.gmra.mxu0 %v463_v2  ;;  %734 = vmatmul.mubr.f32.vlgmr.msra.gmra.mxu1 %v463_v2 }
  0xa6   : > { %626 = vmatprep.mubr.f32.mxu0 %v2198_v3  ;;  %739 = vmatprep.mubr.f32.mxu1 %v2198_v3 }
  0xa9   : > { %627 = vmatmul.mubr.f32.gmra.mxu0 %v464_v4  ;;  %740 = vmatmul.mubr.f32.gmra.mxu1 %v464_v4 }
  0xaa   : > { %632 = vmatprep.mubr.f32.mxu0 %v2198_v3  ;;  %745 = vmatprep.mubr.f32.mxu1 %v2198_v3 }
  0xad   : > { %633 = vmatmul.mubr.f32.gmra.mxu0 %v465_v5  ;;  %746 = vmatmul.mubr.f32.gmra.mxu1 %v465_v5 }
  0xae   : > { %638 = vmatprep.mubr.f32.mxu0 %v2198_v3  ;;  %751 = vmatprep.mubr.f32.mxu1 %v2198_v3 }
  0xb1   : > { %639 = vmatmul.mubr.f32.gmra.mxu0 %v466_v6  ;;  %752 = vmatmul.mubr.f32.gmra.mxu1 %v466_v6 }
  0xb2   : > { %644 = vmatprep.mubr.f32.mxu0 %v2198_v3  ;;  %757 = vmatprep.mubr.f32.mxu1 %v2198_v3 }
  0xb5   : > { %645 = vmatmul.mubr.f32.gmra.mxu0 %v467_v7  ;;  %758 = vmatmul.mubr.f32.gmra.mxu1 %v467_v7 }
  0xb6   : > { %650 = vmatprep.mubr.f32.mxu0 %v2198_v3  ;;  %763 = vmatprep.mubr.f32.mxu1 %v2198_v3 }
  0xb9   : > { %651 = vmatmul.mubr.f32.gmra.mxu0 %v468_v8  ;;  %764 = vmatmul.mubr.f32.gmra.mxu1 %v468_v8 }
  0xba   : > { %656 = vmatprep.mubr.f32.mxu0 %v2198_v3  ;;  %769 = vmatprep.mubr.f32.mxu1 %v2198_v3 }
  0xbd   : > { %657 = vmatmul.mubr.f32.gmra.mxu0 %v469_v9  ;;  %770 = vmatmul.mubr.f32.gmra.mxu1 %v469_v9 }
  0xbe   : > { %662 = vmatprep.mubr.f32.mxu0 %v2198_v3  ;;  %775 = vmatprep.mubr.f32.mxu1 %v2198_v3 }
  0xc1   : > { %663 = vmatmul.mubr.f32.gmra.mxu0 %v470_v10  ;;  %776 = vmatmul.mubr.f32.gmra.mxu1 %v470_v10 }
 0x165   : > { %v622_v21 = vpop.f32.mrf.mxu0  ;;  %v735_v22 = vpop.f32.mrf.mxu1 }
 0x166   : > { %v623_v23 = vadd.f32 %v622_v21, %v2514_v17  ;;  %v736_v24 = vadd.f32 %v735_v22, %v2517_v18 }
 0x167   : > { %v624_v25 = vpop.f32.mrf.mxu0  ;;  %v737_v26 = vpop.f32.mrf.mxu1 }
 0x168   : > { %782 = vst [vmem:[#allocation2] sm:$0xff] %v623_v23  ;;  %784 = vst [vmem:[#allocation2 + $0x10] sm:$0xff] %v736_v24  ;;  %v625_v27 = vadd.f32 %v624_v25, %v2520_v19  ;;  %v738_v28 = vadd.f32 %v737_v26, %v2523_v20 }
 0x169   : > { %v628_v29 = vpop.f32.mrf.mxu0  ;;  %v741_v30 = vpop.f32.mrf.mxu1 }
 0x16a   : > { %783 = vst [vmem:[#allocation2 + $0x8] sm:$0xff] %v625_v27  ;;  %785 = vst [vmem:[#allocation2 + $0x18] sm:$0xff] %v738_v28  ;;  %v629_v31 = vadd.f32 %v628_v29, %v2514_v17  ;;  %v742_v32 = vadd.f32 %v741_v30, %v2517_v18 }
 0x16b   : > { %v630_v33 = vpop.f32.mrf.mxu0  ;;  %v743_v34 = vpop.f32.mrf.mxu1 }
 0x16c   : > { %786 = vst [vmem:[#allocation2 + $0x20] sm:$0xff] %v629_v31  ;;  %788 = vst [vmem:[#allocation2 + $0x30] sm:$0xff] %v742_v32  ;;  %v631_v35 = vadd.f32 %v630_v33, %v2520_v19  ;;  %v744_v36 = vadd.f32 %v743_v34, %v2523_v20 }
 0x16d   : > { %v634_v37 = vpop.f32.mrf.mxu0  ;;  %v747_v38 = vpop.f32.mrf.mxu1 }
 0x16e   : > { %787 = vst [vmem:[#allocation2 + $0x28] sm:$0xff] %v631_v35  ;;  %789 = vst [vmem:[#allocation2 + $0x38] sm:$0xff] %v744_v36  ;;  %v635_v39 = vadd.f32 %v634_v37, %v2514_v17  ;;  %v748_v40 = vadd.f32 %v747_v38, %v2517_v18 }
 0x16f   : > { %v636_v41 = vpop.f32.mrf.mxu0  ;;  %v749_v42 = vpop.f32.mrf.mxu1 }
 0x170   : > { %790 = vst [vmem:[#allocation2 + $0x40] sm:$0xff] %v635_v39  ;;  %792 = vst [vmem:[#allocation2 + $0x50] sm:$0xff] %v748_v40  ;;  %v637_v43 = vadd.f32 %v636_v41, %v2520_v19  ;;  %v750_v44 = vadd.f32 %v749_v42, %v2523_v20 }
 0x171   : > { %v640_v45 = vpop.f32.mrf.mxu0  ;;  %v753_v46 = vpop.f32.mrf.mxu1 }
 0x172   : > { %791 = vst [vmem:[#allocation2 + $0x48] sm:$0xff] %v637_v43  ;;  %793 = vst [vmem:[#allocation2 + $0x58] sm:$0xff] %v750_v44  ;;  %v641_v47 = vadd.f32 %v640_v45, %v2514_v17  ;;  %v754_v48 = vadd.f32 %v753_v46, %v2517_v18 }
 0x173   : > { %v642_v49 = vpop.f32.mrf.mxu0  ;;  %v755_v50 = vpop.f32.mrf.mxu1 }
 0x174   : > { %794 = vst [vmem:[#allocation2 + $0x60] sm:$0xff] %v641_v47  ;;  %796 = vst [vmem:[#allocation2 + $0x70] sm:$0xff] %v754_v48  ;;  %v643_v51 = vadd.f32 %v642_v49, %v2520_v19  ;;  %v756_v52 = vadd.f32 %v755_v50, %v2523_v20 }
 0x175   : > { %v646_v53 = vpop.f32.mrf.mxu0  ;;  %v759_v54 = vpop.f32.mrf.mxu1 }
 0x176   : > { %795 = vst [vmem:[#allocation2 + $0x68] sm:$0xff] %v643_v51  ;;  %797 = vst [vmem:[#allocation2 + $0x78] sm:$0xff] %v756_v52  ;;  %v647_v55 = vadd.f32 %v646_v53, %v2514_v17  ;;  %v760_v56 = vadd.f32 %v759_v54, %v2517_v18 }
 0x177   : > { %v648_v57 = vpop.f32.mrf.mxu0  ;;  %v761_v58 = vpop.f32.mrf.mxu1 }
 0x178   : > { %798 = vst [vmem:[#allocation2 + $0x80] sm:$0xff] %v647_v55  ;;  %800 = vst [vmem:[#allocation2 + $0x90] sm:$0xff] %v760_v56  ;;  %v649_v59 = vadd.f32 %v648_v57, %v2520_v19  ;;  %v762_v60 = vadd.f32 %v761_v58, %v2523_v20 }
 0x179   : > { %v652_v61 = vpop.f32.mrf.mxu0  ;;  %v765_v62 = vpop.f32.mrf.mxu1 }
 0x17a   : > { %799 = vst [vmem:[#allocation2 + $0x88] sm:$0xff] %v649_v59  ;;  %801 = vst [vmem:[#allocation2 + $0x98] sm:$0xff] %v762_v60  ;;  %v653_v63 = vadd.f32 %v652_v61, %v2514_v17  ;;  %v766_v1 = vadd.f32 %v765_v62, %v2517_v18 }
 0x17b   : > { %v654_v2 = vpop.f32.mrf.mxu0  ;;  %v767_v3 = vpop.f32.mrf.mxu1 }
 0x17c   : > { %802 = vst [vmem:[#allocation2 + $0xa0] sm:$0xff] %v653_v63  ;;  %804 = vst [vmem:[#allocation2 + $0xb0] sm:$0xff] %v766_v1  ;;  %v655_v4 = vadd.f32 %v654_v2, %v2520_v19  ;;  %v768_v5 = vadd.f32 %v767_v3, %v2523_v20 }
 0x17d   : > { %v658_v6 = vpop.f32.mrf.mxu0  ;;  %v771_v7 = vpop.f32.mrf.mxu1 }
 0x17e   : > { %803 = vst [vmem:[#allocation2 + $0xa8] sm:$0xff] %v655_v4  ;;  %805 = vst [vmem:[#allocation2 + $0xb8] sm:$0xff] %v768_v5  ;;  %v659_v8 = vadd.f32 %v658_v6, %v2514_v17  ;;  %v772_v9 = vadd.f32 %v771_v7, %v2517_v18 }
 0x17f   : > { %v660_v10 = vpop.f32.mrf.mxu0  ;;  %v773_v11 = vpop.f32.mrf.mxu1 }
 0x180   : > { %806 = vst [vmem:[#allocation2 + $0xc0] sm:$0xff] %v659_v8  ;;  %808 = vst [vmem:[#allocation2 + $0xd0] sm:$0xff] %v772_v9  ;;  %v661_v12 = vadd.f32 %v660_v10, %v2520_v19  ;;  %v774_v13 = vadd.f32 %v773_v11, %v2523_v20 }
 0x181   : > { %v664_v14 = vpop.f32.mrf.mxu0  ;;  %v777_v15 = vpop.f32.mrf.mxu1 }
 0x182   : > { %807 = vst [vmem:[#allocation2 + $0xc8] sm:$0xff] %v661_v12  ;;  %809 = vst [vmem:[#allocation2 + $0xd8] sm:$0xff] %v774_v13  ;;  %v665_v16 = vadd.f32 %v664_v14, %v2514_v17  ;;  %v778_v21 = vadd.f32 %v777_v15, %v2517_v18 }
 0x183   : > { %v666_v22 = vpop.f32.mrf.mxu0  ;;  %v779_v23 = vpop.f32.mrf.mxu1 }
 0x184   : > { %810 = vst [vmem:[#allocation2 + $0xe0] sm:$0xff] %v665_v16  ;;  %812 = vst [vmem:[#allocation2 + $0xf0] sm:$0xff] %v778_v21  ;;  %v667_v24 = vadd.f32 %v666_v22, %v2520_v19  ;;  %v780_v25 = vadd.f32 %v779_v23, %v2523_v20 }
 0x186   : > { %811 = vst [vmem:[#allocation2 + $0xe8] sm:$0xff] %v667_v24  ;;  %813 = vst [vmem:[#allocation2 + $0xf8] sm:$0xff] %v780_v25 }
 0x187 PF: > { %p1716_p5 = scmp.le.s32.totalorder %s2167_s27, 0 }
 0x189   : > { %817 = sbr.rel (%p1716_p5) target bundleno = 658 (0x292), region = 68 }
 0x18e   : > { %v887_v17 = vld [vmem:[%s2429_s16 + $0x1e8] sm:$0xff]  ;;  %v889_v18 = vld [vmem:[%s2429_s16 + $0x1f8] sm:$0xff]  ;;  %v886_v19 = vld [vmem:[%s2429_s16 + $0x1e0] sm:$0xff] }
 0x18f   : > { %911 = vmatprep.subr.mxu0 %v887_v17  ;;  %1024 = vmatprep.subr.mxu1 %v889_v18  ;;  %v888_v20 = vld [vmem:[%s2429_s16 + $0x1f0] sm:$0xff]  ;;  %v883_v26 = vld [vmem:[%s2429_s16 + $0x1c8] sm:$0xff]  ;;  %v885_v27 = vld [vmem:[%s2429_s16 + $0x1d8] sm:$0xff] }
 0x190   : > { %912 = vmatpush1.msra.mxu0 %v886_v19  ;;  %1025 = vmatpush1.msra.mxu1 %v888_v20  ;;  %v882_v28 = vld [vmem:[%s2429_s16 + $0x1c0] sm:$0xff]  ;;  %v884_v29 = vld [vmem:[%s2429_s16 + $0x1d0] sm:$0xff]  ;;  %v879_v30 = vld [vmem:[%s2429_s16 + $0x1a8] sm:$0xff]  ;;  %v2199_v19 = vmov 0.0  }
 0x191   : > { %913 = vmatprep.subr.mxu0 %v883_v26  ;;  %1026 = vmatprep.subr.mxu1 %v885_v27  ;;  %v881_v31 = vld [vmem:[%s2429_s16 + $0x1b8] sm:$0xff]  ;;  %v878_v32 = vld [vmem:[%s2429_s16 + $0x1a0] sm:$0xff]  ;;  %v880_v33 = vld [vmem:[%s2429_s16 + $0x1b0] sm:$0xff] }
 0x192   : > { %914 = vmatpush1.msra.mxu0 %v882_v28  ;;  %1027 = vmatpush1.msra.mxu1 %v884_v29  ;;  %v875_v34 = vld [vmem:[%s2429_s16 + $0x188] sm:$0xff]  ;;  %v877_v35 = vld [vmem:[%s2429_s16 + $0x198] sm:$0xff]  ;;  %v874_v36 = vld [vmem:[%s2429_s16 + $0x180] sm:$0xff] }
 0x193   : > { %915 = vmatprep.subr.mxu0 %v879_v30  ;;  %1028 = vmatprep.subr.mxu1 %v881_v31  ;;  %v876_v37 = vld [vmem:[%s2429_s16 + $0x190] sm:$0xff]  ;;  %v871_v38 = vld [vmem:[%s2429_s16 + $0x168] sm:$0xff]  ;;  %v873_v39 = vld [vmem:[%s2429_s16 + $0x178] sm:$0xff] }
 0x194   : > { %916 = vmatpush1.msra.mxu0 %v878_v32  ;;  %1029 = vmatpush1.msra.mxu1 %v880_v33  ;;  %v870_v40 = vld [vmem:[%s2429_s16 + $0x160] sm:$0xff]  ;;  %v872_v41 = vld [vmem:[%s2429_s16 + $0x170] sm:$0xff]  ;;  %v867_v42 = vld [vmem:[%s2429_s16 + $0x148] sm:$0xff]  ;;  %v891_v32 = vlaneseq }
 0x195   : > { %917 = vmatprep.subr.mxu0 %v875_v34  ;;  %1030 = vmatprep.subr.mxu1 %v877_v35  ;;  %v869_v43 = vld [vmem:[%s2429_s16 + $0x158] sm:$0xff]  ;;  %v866_v44 = vld [vmem:[%s2429_s16 + $0x140] sm:$0xff]  ;;  %v868_v45 = vld [vmem:[%s2429_s16 + $0x150] sm:$0xff] }
 0x196   : > { %918 = vmatpush1.msra.mxu0 %v874_v36  ;;  %1031 = vmatpush1.msra.mxu1 %v876_v37  ;;  %v863_v46 = vld [vmem:[%s2429_s16 + $0x128] sm:$0xff]  ;;  %v865_v47 = vld [vmem:[%s2429_s16 + $0x138] sm:$0xff]  ;;  %v862_v48 = vld [vmem:[%s2429_s16 + $0x120] sm:$0xff]  ;;  %v892_v33 = vshrl.u32 %v891_v32, 7 }
 0x197   : > { %919 = vmatprep.subr.mxu0 %v871_v38  ;;  %1032 = vmatprep.subr.mxu1 %v873_v39  ;;  %v864_v49 = vld [vmem:[%s2429_s16 + $0x130] sm:$0xff]  ;;  %v859_v50 = vld [vmem:[%s2429_s16 + $0x108] sm:$0xff]  ;;  %v861_v51 = vld [vmem:[%s2429_s16 + $0x118] sm:$0xff] }
 0x198   : > { %920 = vmatpush1.msra.mxu0 %v870_v40  ;;  %1033 = vmatpush1.msra.mxu1 %v872_v41  ;;  %v858_v52 = vld [vmem:[%s2429_s16 + $0x100] sm:$0xff]  ;;  %v860_v53 = vld [vmem:[%s2429_s16 + $0x110] sm:$0xff]  ;;  %v855_v54 = vld [vmem:[%s2429_s16 + $0xe8] sm:$0xff]  ;;  %v893_v34 = vsub.s32 0, %v892_v33  ;;  %v901_v35 = vsub.s32 2, %v892_v33  ;;  %v897_v36 = vsub.s32 1, %v892_v33 }
 0x199   : > { %921 = vmatprep.subr.mxu0 %v867_v42  ;;  %1034 = vmatprep.subr.mxu1 %v869_v43  ;;  %v857_v55 = vld [vmem:[%s2429_s16 + $0xf8] sm:$0xff]  ;;  %v854_v56 = vld [vmem:[%s2429_s16 + $0xe0] sm:$0xff]  ;;  %v856_v57 = vld [vmem:[%s2429_s16 + $0xf0] sm:$0xff]  ;;  %v905_v37 = vsub.s32 3, %v892_v33 }
 0x19a   : > { %922 = vmatpush1.msra.mxu0 %v866_v44  ;;  %1035 = vmatpush1.msra.mxu1 %v868_v45  ;;  %v851_v58 = vld [vmem:[%s2429_s16 + $0xc8] sm:$0xff]  ;;  %v853_v59 = vld [vmem:[%s2429_s16 + $0xd8] sm:$0xff]  ;;  %v850_v60 = vld [vmem:[%s2429_s16 + $0xc0] sm:$0xff]  ;;  %v2623_v38 = vrot.slane %v2443_v0, %v893_v34  ;;  %v2626_v39 = vrot.slane %v2443_v0, %v901_v35  ;;  %v2629_v40 = vrot.slane %v2443_v0, %v897_v36 }
 0x19b   : > { %923 = vmatprep.subr.mxu0 %v863_v46  ;;  %1036 = vmatprep.subr.mxu1 %v865_v47  ;;  %v852_v61 = vld [vmem:[%s2429_s16 + $0xd0] sm:$0xff]  ;;  %v847_v62 = vld [vmem:[%s2429_s16 + $0xa8] sm:$0xff]  ;;  %v849_v63 = vld [vmem:[%s2429_s16 + $0xb8] sm:$0xff]  ;;  %v2632_v41 = vrot.slane %v2443_v0, %v905_v37 }
 0x19c   : > { %924 = vmatpush1.msra.mxu0 %v862_v48  ;;  %1037 = vmatpush1.msra.mxu1 %v864_v49  ;;  %v846_v1 = vld [vmem:[%s2429_s16 + $0xa0] sm:$0xff]  ;;  %v848_v2 = vld [vmem:[%s2429_s16 + $0xb0] sm:$0xff]  ;;  %v843_v3 = vld [vmem:[%s2429_s16 + $0x88] sm:$0xff] }
 0x19d   : > { %925 = vmatprep.subr.mxu0 %v859_v50  ;;  %1038 = vmatprep.subr.mxu1 %v861_v51  ;;  %v845_v4 = vld [vmem:[%s2429_s16 + $0x98] sm:$0xff]  ;;  %v842_v5 = vld [vmem:[%s2429_s16 + $0x80] sm:$0xff]  ;;  %v844_v6 = vld [vmem:[%s2429_s16 + $0x90] sm:$0xff] }
 0x19e   : > { %926 = vmatpush1.msra.mxu0 %v858_v52  ;;  %1039 = vmatpush1.msra.mxu1 %v860_v53  ;;  %v839_v7 = vld [vmem:[%s2429_s16 + $0x68] sm:$0xff]  ;;  %v841_v8 = vld [vmem:[%s2429_s16 + $0x78] sm:$0xff]  ;;  %v838_v9 = vld [vmem:[%s2429_s16 + $0x60] sm:$0xff] }
 0x19f   : > { %927 = vmatprep.subr.mxu0 %v855_v54  ;;  %1040 = vmatprep.subr.mxu1 %v857_v55  ;;  %v840_v10 = vld [vmem:[%s2429_s16 + $0x70] sm:$0xff]  ;;  %v835_v11 = vld [vmem:[%s2429_s16 + $0x48] sm:$0xff]  ;;  %v837_v12 = vld [vmem:[%s2429_s16 + $0x58] sm:$0xff] }
 0x1a0   : > { %928 = vmatpush1.msra.mxu0 %v854_v56  ;;  %1041 = vmatpush1.msra.mxu1 %v856_v57  ;;  %v834_v13 = vld [vmem:[%s2429_s16 + $0x40] sm:$0xff]  ;;  %v836_v14 = vld [vmem:[%s2429_s16 + $0x50] sm:$0xff]  ;;  %v831_v15 = vld [vmem:[%s2429_s16 + $0x28] sm:$0xff] }
 0x1a1   : > { %929 = vmatprep.subr.mxu0 %v851_v58  ;;  %1042 = vmatprep.subr.mxu1 %v853_v59  ;;  %v833_v16 = vld [vmem:[%s2429_s16 + $0x38] sm:$0xff]  ;;  %v830_v21 = vld [vmem:[%s2429_s16 + $0x20] sm:$0xff]  ;;  %v832_v22 = vld [vmem:[%s2429_s16 + $0x30] sm:$0xff] }
 0x1a2   : > { %930 = vmatpush1.msra.mxu0 %v850_v60  ;;  %1043 = vmatpush1.msra.mxu1 %v852_v61  ;;  %v827_v23 = vld [vmem:[%s2429_s16 + $0x8] sm:$0xff]  ;;  %v829_v24 = vld [vmem:[%s2429_s16 + $0x18] sm:$0xff]  ;;  %v826_v25 = vld [vmem:[%s2429_s16] sm:$0xff] }
 0x1a3   : > { %931 = vmatprep.subr.mxu0 %v847_v62  ;;  %1044 = vmatprep.subr.mxu1 %v849_v63  ;;  %v828_v17 = vld [vmem:[%s2429_s16 + $0x10] sm:$0xff]  ;;  %v818_v18 = vld [vmem:[#allocation12] sm:$0xff]  ;;  %v820_v26 = vld [vmem:[#allocation12 + $0x10] sm:$0xff] }
 0x1a4   : > { %932 = vmatpush1.msra.mxu0 %v846_v1  ;;  %1045 = vmatpush1.msra.mxu1 %v848_v2  ;;  %v819_v20 = vld [vmem:[#allocation12 + $0x8] sm:$0xff]  ;;  %v821_v27 = vld [vmem:[#allocation12 + $0x18] sm:$0xff]  ;;  %v822_v28 = vld [vmem:[#allocation12 + $0x20] sm:$0xff] }
 0x1a5   : > { %933 = vmatprep.subr.mxu0 %v843_v3  ;;  %1046 = vmatprep.subr.mxu1 %v845_v4  ;;  %v823_v29 = vld [vmem:[#allocation12 + $0x28] sm:$0xff]  ;;  %v824_v30 = vld [vmem:[#allocation12 + $0x30] sm:$0xff]  ;;  %v825_v31 = vld [vmem:[#allocation12 + $0x38] sm:$0xff] }
 0x1a6   : > { %934 = vmatpush1.msra.mxu0 %v842_v5  ;;  %1047 = vmatpush1.msra.mxu1 %v844_v6 }
 0x1a7   : > { %935 = vmatprep.subr.mxu0 %v839_v7  ;;  %1048 = vmatprep.subr.mxu1 %v841_v8 }
 0x1a8   : > { %936 = vmatpush1.msra.mxu0 %v838_v9  ;;  %1049 = vmatpush1.msra.mxu1 %v840_v10 }
 0x1a9   : > { %937 = vmatprep.subr.mxu0 %v835_v11  ;;  %1050 = vmatprep.subr.mxu1 %v837_v12 }
 0x1aa   : > { %938 = vmatpush1.msra.mxu0 %v834_v13  ;;  %1051 = vmatpush1.msra.mxu1 %v836_v14 }
 0x1ab   : > { %939 = vmatprep.subr.mxu0 %v831_v15  ;;  %1052 = vmatprep.subr.mxu1 %v833_v16 }
 0x1ac   : > { %940 = vmatpush1.msra.mxu0 %v830_v21  ;;  %1053 = vmatpush1.msra.mxu1 %v832_v22 }
 0x1ad   : > { %941 = vmatprep.subr.mxu0 %v827_v23  ;;  %1054 = vmatprep.subr.mxu1 %v829_v24 }
 0x1ae   : > { %942 = vmatpush1.msra.mxu0 %v826_v25  ;;  %975 = vmatprep.mubr.f32.mxu0 %v2199_v19 }
 0x1af   : > { %1055 = vmatpush1.msra.mxu1 %v828_v17  ;;  %1088 = vmatprep.mubr.f32.mxu1 %v2199_v19 }
 0x1b0   : > { %976 = vmatmul.mubr.f32.vlgmr.msra.gmra.mxu0 %v818_v18  ;;  %1089 = vmatmul.mubr.f32.vlgmr.msra.gmra.mxu1 %v818_v18 }
 0x1b1   : > { %981 = vmatprep.mubr.f32.mxu0 %v2199_v19  ;;  %1094 = vmatprep.mubr.f32.mxu1 %v2199_v19 }
 0x1b4   : > { %982 = vmatmul.mubr.f32.gmra.mxu0 %v819_v20  ;;  %1095 = vmatmul.mubr.f32.gmra.mxu1 %v819_v20 }
 0x1b5   : > { %987 = vmatprep.mubr.f32.mxu0 %v2199_v19  ;;  %1100 = vmatprep.mubr.f32.mxu1 %v2199_v19 }
 0x1b8   : > { %988 = vmatmul.mubr.f32.gmra.mxu0 %v820_v26  ;;  %1101 = vmatmul.mubr.f32.gmra.mxu1 %v820_v26 }
 0x1b9   : > { %993 = vmatprep.mubr.f32.mxu0 %v2199_v19  ;;  %1106 = vmatprep.mubr.f32.mxu1 %v2199_v19 }
 0x1bc   : > { %994 = vmatmul.mubr.f32.gmra.mxu0 %v821_v27  ;;  %1107 = vmatmul.mubr.f32.gmra.mxu1 %v821_v27 }
 0x1bd   : > { %999 = vmatprep.mubr.f32.mxu0 %v2199_v19  ;;  %1112 = vmatprep.mubr.f32.mxu1 %v2199_v19 }
 0x1c0   : > { %1000 = vmatmul.mubr.f32.gmra.mxu0 %v822_v28  ;;  %1113 = vmatmul.mubr.f32.gmra.mxu1 %v822_v28 }
 0x1c1   : > { %1005 = vmatprep.mubr.f32.mxu0 %v2199_v19  ;;  %1118 = vmatprep.mubr.f32.mxu1 %v2199_v19 }
 0x1c4   : > { %1006 = vmatmul.mubr.f32.gmra.mxu0 %v823_v29  ;;  %1119 = vmatmul.mubr.f32.gmra.mxu1 %v823_v29 }
 0x1c5   : > { %1011 = vmatprep.mubr.f32.mxu0 %v2199_v19  ;;  %1124 = vmatprep.mubr.f32.mxu1 %v2199_v19 }
 0x1c8   : > { %1012 = vmatmul.mubr.f32.gmra.mxu0 %v824_v30  ;;  %1125 = vmatmul.mubr.f32.gmra.mxu1 %v824_v30 }
 0x1c9   : > { %1017 = vmatprep.mubr.f32.mxu0 %v2199_v19  ;;  %1130 = vmatprep.mubr.f32.mxu1 %v2199_v19 }
 0x1cc   : > { %1018 = vmatmul.mubr.f32.gmra.mxu0 %v825_v31  ;;  %1131 = vmatmul.mubr.f32.gmra.mxu1 %v825_v31 }
 0x270   : > { %v977_v42 = vpop.f32.mrf.mxu0  ;;  %v1090_v43 = vpop.f32.mrf.mxu1 }
 0x271   : > { %v978_v44 = vadd.f32 %v977_v42, %v2623_v38  ;;  %v1091_v45 = vadd.f32 %v1090_v43, %v2626_v39 }
 0x272   : > { %v979_v46 = vpop.f32.mrf.mxu0  ;;  %v1092_v47 = vpop.f32.mrf.mxu1 }
 0x273   : > { %1137 = vst [vmem:[#allocation2] sm:$0xff] %v978_v44  ;;  %1139 = vst [vmem:[#allocation2 + $0x10] sm:$0xff] %v1091_v45  ;;  %v980_v48 = vadd.f32 %v979_v46, %v2629_v40  ;;  %v1093_v49 = vadd.f32 %v1092_v47, %v2632_v41 }
 0x274   : > { %v983_v50 = vpop.f32.mrf.mxu0  ;;  %v1096_v51 = vpop.f32.mrf.mxu1 }
 0x275   : > { %1138 = vst [vmem:[#allocation2 + $0x8] sm:$0xff] %v980_v48  ;;  %1140 = vst [vmem:[#allocation2 + $0x18] sm:$0xff] %v1093_v49  ;;  %v984_v0 = vadd.f32 %v983_v50, %v2623_v38  ;;  %v1097_v52 = vadd.f32 %v1096_v51, %v2626_v39 }
 0x276   : > { %v985_v53 = vpop.f32.mrf.mxu0  ;;  %v1098_v54 = vpop.f32.mrf.mxu1 }
 0x277   : > { %1141 = vst [vmem:[#allocation2 + $0x20] sm:$0xff] %v984_v0  ;;  %1143 = vst [vmem:[#allocation2 + $0x30] sm:$0xff] %v1097_v52  ;;  %v986_v55 = vadd.f32 %v985_v53, %v2629_v40  ;;  %v1099_v56 = vadd.f32 %v1098_v54, %v2632_v41 }
 0x278   : > { %v989_v57 = vpop.f32.mrf.mxu0  ;;  %v1102_v58 = vpop.f32.mrf.mxu1 }
 0x279   : > { %1142 = vst [vmem:[#allocation2 + $0x28] sm:$0xff] %v986_v55  ;;  %1144 = vst [vmem:[#allocation2 + $0x38] sm:$0xff] %v1099_v56  ;;  %v990_v59 = vadd.f32 %v989_v57, %v2623_v38  ;;  %v1103_v60 = vadd.f32 %v1102_v58, %v2626_v39 }
 0x27a   : > { %v991_v61 = vpop.f32.mrf.mxu0  ;;  %v1104_v62 = vpop.f32.mrf.mxu1 }
 0x27b   : > { %1145 = vst [vmem:[#allocation2 + $0x40] sm:$0xff] %v990_v59  ;;  %1147 = vst [vmem:[#allocation2 + $0x50] sm:$0xff] %v1103_v60  ;;  %v992_v63 = vadd.f32 %v991_v61, %v2629_v40  ;;  %v1105_v1 = vadd.f32 %v1104_v62, %v2632_v41 }
 0x27c   : > { %v995_v2 = vpop.f32.mrf.mxu0  ;;  %v1108_v3 = vpop.f32.mrf.mxu1 }
 0x27d   : > { %1146 = vst [vmem:[#allocation2 + $0x48] sm:$0xff] %v992_v63  ;;  %1148 = vst [vmem:[#allocation2 + $0x58] sm:$0xff] %v1105_v1  ;;  %v996_v4 = vadd.f32 %v995_v2, %v2623_v38  ;;  %v1109_v5 = vadd.f32 %v1108_v3, %v2626_v39 }
 0x27e   : > { %v997_v6 = vpop.f32.mrf.mxu0  ;;  %v1110_v7 = vpop.f32.mrf.mxu1 }
 0x27f   : > { %1149 = vst [vmem:[#allocation2 + $0x60] sm:$0xff] %v996_v4  ;;  %1151 = vst [vmem:[#allocation2 + $0x70] sm:$0xff] %v1109_v5  ;;  %v998_v8 = vadd.f32 %v997_v6, %v2629_v40  ;;  %v1111_v9 = vadd.f32 %v1110_v7, %v2632_v41 }
 0x280   : > { %v1001_v10 = vpop.f32.mrf.mxu0  ;;  %v1114_v11 = vpop.f32.mrf.mxu1 }
 0x281   : > { %1150 = vst [vmem:[#allocation2 + $0x68] sm:$0xff] %v998_v8  ;;  %1152 = vst [vmem:[#allocation2 + $0x78] sm:$0xff] %v1111_v9  ;;  %v1002_v12 = vadd.f32 %v1001_v10, %v2623_v38  ;;  %v1115_v13 = vadd.f32 %v1114_v11, %v2626_v39 }
 0x282   : > { %v1003_v14 = vpop.f32.mrf.mxu0  ;;  %v1116_v15 = vpop.f32.mrf.mxu1 }
 0x283   : > { %1153 = vst [vmem:[#allocation2 + $0x80] sm:$0xff] %v1002_v12  ;;  %1155 = vst [vmem:[#allocation2 + $0x90] sm:$0xff] %v1115_v13  ;;  %v1004_v16 = vadd.f32 %v1003_v14, %v2629_v40  ;;  %v1117_v21 = vadd.f32 %v1116_v15, %v2632_v41 }
 0x284   : > { %v1007_v22 = vpop.f32.mrf.mxu0  ;;  %v1120_v23 = vpop.f32.mrf.mxu1 }
 0x285   : > { %1154 = vst [vmem:[#allocation2 + $0x88] sm:$0xff] %v1004_v16  ;;  %1156 = vst [vmem:[#allocation2 + $0x98] sm:$0xff] %v1117_v21  ;;  %v1008_v24 = vadd.f32 %v1007_v22, %v2623_v38  ;;  %v1121_v25 = vadd.f32 %v1120_v23, %v2626_v39 }
 0x286   : > { %v1009_v17 = vpop.f32.mrf.mxu0  ;;  %v1122_v18 = vpop.f32.mrf.mxu1 }
 0x287   : > { %1157 = vst [vmem:[#allocation2 + $0xa0] sm:$0xff] %v1008_v24  ;;  %1159 = vst [vmem:[#allocation2 + $0xb0] sm:$0xff] %v1121_v25  ;;  %v1010_v19 = vadd.f32 %v1009_v17, %v2629_v40  ;;  %v1123_v20 = vadd.f32 %v1122_v18, %v2632_v41 }
 0x288   : > { %v1013_v26 = vpop.f32.mrf.mxu0  ;;  %v1126_v27 = vpop.f32.mrf.mxu1 }
 0x289   : > { %1158 = vst [vmem:[#allocation2 + $0xa8] sm:$0xff] %v1010_v19  ;;  %1160 = vst [vmem:[#allocation2 + $0xb8] sm:$0xff] %v1123_v20  ;;  %v1014_v28 = vadd.f32 %v1013_v26, %v2623_v38  ;;  %v1127_v29 = vadd.f32 %v1126_v27, %v2626_v39 }
 0x28a   : > { %v1015_v30 = vpop.f32.mrf.mxu0  ;;  %v1128_v31 = vpop.f32.mrf.mxu1 }
 0x28b   : > { %1161 = vst [vmem:[#allocation2 + $0xc0] sm:$0xff] %v1014_v28  ;;  %1163 = vst [vmem:[#allocation2 + $0xd0] sm:$0xff] %v1127_v29  ;;  %v1016_v32 = vadd.f32 %v1015_v30, %v2629_v40  ;;  %v1129_v33 = vadd.f32 %v1128_v31, %v2632_v41 }
 0x28c   : > { %v1019_v34 = vpop.f32.mrf.mxu0  ;;  %v1132_v35 = vpop.f32.mrf.mxu1 }
 0x28d   : > { %1162 = vst [vmem:[#allocation2 + $0xc8] sm:$0xff] %v1016_v32  ;;  %1164 = vst [vmem:[#allocation2 + $0xd8] sm:$0xff] %v1129_v33  ;;  %v1020_v36 = vadd.f32 %v1019_v34, %v2623_v38  ;;  %v1133_v37 = vadd.f32 %v1132_v35, %v2626_v39 }
 0x28e   : > { %v1021_v42 = vpop.f32.mrf.mxu0  ;;  %v1134_v43 = vpop.f32.mrf.mxu1 }
 0x28f   : > { %1165 = vst [vmem:[#allocation2 + $0xe0] sm:$0xff] %v1020_v36  ;;  %1167 = vst [vmem:[#allocation2 + $0xf0] sm:$0xff] %v1133_v37  ;;  %v1022_v44 = vadd.f32 %v1021_v42, %v2629_v40  ;;  %v1135_v45 = vadd.f32 %v1134_v43, %v2632_v41 }
 0x291   : > { %1166 = vst [vmem:[#allocation2 + $0xe8] sm:$0xff] %v1022_v44  ;;  %1168 = vst [vmem:[#allocation2 + $0xf8] sm:$0xff] %v1135_v45 }
 0x292 PF: > { %v2667_v38 = vld [vmem:[%s2429_s16 + $0x200] sm:$0xff]  ;;  %v2670_v39 = vld [vmem:[%s2429_s16 + $0x208] sm:$0xff]  ;;  %v2673_v40 = vld [vmem:[%s2429_s16 + $0x210] sm:$0xff]  ;;  %s2866_s10 = smov 0  }
 0x293   : > { %3081 = vst [vmem:[#allocation23_spill] sm:$0xff] %v2673_v40  ;;  %v2676_v41 = vld [vmem:[%s2429_s16 + $0x218] sm:$0xff]  ;;  %v2679_v46 = vld [vmem:[%s2429_s16 + $0x220] sm:$0xff]  ;;  %v2682_v47 = vld [vmem:[%s2429_s16 + $0x228] sm:$0xff] }
 0x294   : > { %3082 = vst [vmem:[#allocation24_spill] sm:$0xff] %v2676_v41  ;;  %v2685_v48 = vld [vmem:[%s2429_s16 + $0x230] sm:$0xff]  ;;  %v2688_v49 = vld [vmem:[%s2429_s16 + $0x238] sm:$0xff]  ;;  %v2691_v50 = vld [vmem:[%s2429_s16 + $0x240] sm:$0xff] }
 0x295   : > { %v2694_v51 = vld [vmem:[%s2429_s16 + $0x248] sm:$0xff]  ;;  %v2697_v0 = vld [vmem:[%s2429_s16 + $0x250] sm:$0xff]  ;;  %v2700_v52 = vld [vmem:[%s2429_s16 + $0x258] sm:$0xff] }
 0x296   : > { %3083 = vst [vmem:[#allocation25_spill] sm:$0xff] %v2697_v0  ;;  %v2703_v53 = vld [vmem:[%s2429_s16 + $0x260] sm:$0xff]  ;;  %v2706_v54 = vld [vmem:[%s2429_s16 + $0x268] sm:$0xff]  ;;  %v2709_v55 = vld [vmem:[%s2429_s16 + $0x270] sm:$0xff] }
 0x297   : > { %v2712_v56 = vld [vmem:[%s2429_s16 + $0x278] sm:$0xff]  ;;  %v2715_v57 = vld [vmem:[%s2429_s16 + $0x280] sm:$0xff]  ;;  %v2718_v58 = vld [vmem:[%s2429_s16 + $0x288] sm:$0xff] }
 0x298   : > { %v2721_v59 = vld [vmem:[%s2429_s16 + $0x290] sm:$0xff]  ;;  %v2724_v60 = vld [vmem:[%s2429_s16 + $0x298] sm:$0xff]  ;;  %v2727_v61 = vld [vmem:[%s2429_s16 + $0x2a0] sm:$0xff] }
 0x299   : > { %v2730_v62 = vld [vmem:[%s2429_s16 + $0x2a8] sm:$0xff]  ;;  %v2733_v63 = vld [vmem:[%s2429_s16 + $0x2b0] sm:$0xff]  ;;  %v2736_v1 = vld [vmem:[%s2429_s16 + $0x2b8] sm:$0xff] }
 0x29a   : > { %3084 = vst [vmem:[#allocation26_spill] sm:$0xff] %v2736_v1  ;;  %v2739_v2 = vld [vmem:[%s2429_s16 + $0x2c0] sm:$0xff]  ;;  %v2742_v3 = vld [vmem:[%s2429_s16 + $0x2c8] sm:$0xff]  ;;  %v2745_v4 = vld [vmem:[%s2429_s16 + $0x2d0] sm:$0xff] }
 0x29b   : > { %3085 = vst [vmem:[#allocation27_spill] sm:$0xff] %v2739_v2  ;;  %3086 = vst [vmem:[#allocation28_spill] sm:$0xff] %v2742_v3  ;;  %v2748_v5 = vld [vmem:[%s2429_s16 + $0x2d8] sm:$0xff]  ;;  %v2751_v6 = vld [vmem:[%s2429_s16 + $0x2e0] sm:$0xff] }
 0x29c   : > { %3087 = vst [vmem:[#allocation29_spill] sm:$0xff] %v2745_v4  ;;  %3088 = vst [vmem:[#allocation30_spill] sm:$0xff] %v2748_v5  ;;  %v2754_v7 = vld [vmem:[%s2429_s16 + $0x2e8] sm:$0xff]  ;;  %v2757_v8 = vld [vmem:[%s2429_s16 + $0x2f0] sm:$0xff] }
 0x29d   : > { %3089 = vst [vmem:[#allocation31_spill] sm:$0xff] %v2751_v6  ;;  %3090 = vst [vmem:[#allocation32_spill] sm:$0xff] %v2754_v7  ;;  %v2760_v9 = vld [vmem:[%s2429_s16 + $0x2f8] sm:$0xff]  ;;  %v2763_v10 = vld [vmem:[%s2429_s16 + $0x300] sm:$0xff] }
 0x29e   : > { %3091 = vst [vmem:[#allocation33_spill] sm:$0xff] %v2757_v8  ;;  %3092 = vst [vmem:[#allocation34_spill] sm:$0xff] %v2760_v9  ;;  %v2766_v11 = vld [vmem:[%s2429_s16 + $0x308] sm:$0xff]  ;;  %v2769_v12 = vld [vmem:[%s2429_s16 + $0x310] sm:$0xff] }
 0x29f   : > { %3093 = vst [vmem:[#allocation35_spill] sm:$0xff] %v2763_v10  ;;  %3094 = vst [vmem:[#allocation36_spill] sm:$0xff] %v2766_v11  ;;  %v2772_v13 = vld [vmem:[%s2429_s16 + $0x318] sm:$0xff]  ;;  %v2775_v14 = vld [vmem:[%s2429_s16 + $0x320] sm:$0xff] }
 0x2a0   : > { %3095 = vst [vmem:[#allocation37_spill] sm:$0xff] %v2769_v12  ;;  %3096 = vst [vmem:[#allocation38_spill] sm:$0xff] %v2772_v13  ;;  %v2778_v15 = vld [vmem:[%s2429_s16 + $0x328] sm:$0xff]  ;;  %v2781_v16 = vld [vmem:[%s2429_s16 + $0x330] sm:$0xff] }
 0x2a1   : > { %3097 = vst [vmem:[#allocation39_spill] sm:$0xff] %v2775_v14  ;;  %3098 = vst [vmem:[#allocation40_spill] sm:$0xff] %v2778_v15  ;;  %v2784_v21 = vld [vmem:[%s2429_s16 + $0x338] sm:$0xff]  ;;  %v2787_v22 = vld [vmem:[%s2429_s16 + $0x340] sm:$0xff] }
 0x2a2   : > { %v2790_v23 = vld [vmem:[%s2429_s16 + $0x348] sm:$0xff]  ;;  %v2793_v24 = vld [vmem:[%s2429_s16 + $0x350] sm:$0xff]  ;;  %v2796_v25 = vld [vmem:[%s2429_s16 + $0x358] sm:$0xff] }
 0x2a3   : > { %v2799_v17 = vld [vmem:[%s2429_s16 + $0x360] sm:$0xff]  ;;  %v2802_v18 = vld [vmem:[%s2429_s16 + $0x368] sm:$0xff]  ;;  %v2805_v19 = vld [vmem:[%s2429_s16 + $0x370] sm:$0xff] }
 0x2a4   : > { %3099 = vst [vmem:[#allocation41_spill] sm:$0xff] %v2799_v17  ;;  %v2808_v20 = vld [vmem:[%s2429_s16 + $0x378] sm:$0xff]  ;;  %v2811_v26 = vld [vmem:[%s2429_s16 + $0x380] sm:$0xff]  ;;  %v2814_v27 = vld [vmem:[%s2429_s16 + $0x388] sm:$0xff] }
 0x2a5   : > { %v2817_v28 = vld [vmem:[%s2429_s16 + $0x390] sm:$0xff]  ;;  %v2820_v29 = vld [vmem:[%s2429_s16 + $0x398] sm:$0xff]  ;;  %v2823_v30 = vld [vmem:[%s2429_s16 + $0x3a0] sm:$0xff] }
 0x2a6   : > { %v2826_v31 = vld [vmem:[%s2429_s16 + $0x3a8] sm:$0xff]  ;;  %v2829_v32 = vld [vmem:[%s2429_s16 + $0x3b0] sm:$0xff]  ;;  %v2832_v33 = vld [vmem:[%s2429_s16 + $0x3b8] sm:$0xff] }
 0x2a7   : > { %v2835_v34 = vld [vmem:[%s2429_s16 + $0x3c0] sm:$0xff]  ;;  %v2838_v35 = vld [vmem:[%s2429_s16 + $0x3c8] sm:$0xff]  ;;  %v2841_v36 = vld [vmem:[%s2429_s16 + $0x3d0] sm:$0xff] }
 0x2a8   : > { %v2844_v37 = vld [vmem:[%s2429_s16 + $0x3d8] sm:$0xff]  ;;  %v2847_v42 = vld [vmem:[%s2429_s16 + $0x3e0] sm:$0xff]  ;;  %v2850_v43 = vld [vmem:[%s2429_s16 + $0x3e8] sm:$0xff] }
 0x2a9   : > { %v2853_v44 = vld [vmem:[%s2429_s16 + $0x3f0] sm:$0xff]  ;;  %v2856_v45 = vld [vmem:[%s2429_s16 + $0x3f8] sm:$0xff] }
 0x2aa   : > { %v1233_v40 = vld [vmem:[%s398_s15] sm:$0xff]   ;;  %v1234_v41 = vld [vmem:[%s407_s23] sm:$0xff]  }
 0x2ab LB: >> { %1250 = vmatprep.subr.mxu0 %v2850_v43  ;;  %1321 = vmatprep.subr.mxu1 %v2856_v45  ;;  %v3100_v17 = vld [vmem:[#allocation41_spill] sm:$0xff]  ;;  %v3101_v15 = vld [vmem:[#allocation40_spill] sm:$0xff]  ;;  %v3102_v14 = vld [vmem:[#allocation39_spill] sm:$0xff]  ;;  %s1733_s4 = sshll.u32 %s2187_s10, 5  ;;  %s1722_s19 = sshll.u32 %s2187_s10, 3  ;;  %s2187_s10 = sphi %s2866_s10, %s1240_s10   ;;  %v2183_v40 = vphi %v1233_v40, %v3120_v40   ;;  %v2179_v41 = vphi %v1234_v41, %v3119_v41  }
 0x2ac   : >> { %1251 = vmatpush1.msra.mxu0 %v2847_v42  ;;  %1322 = vmatpush1.msra.mxu1 %v2853_v44  ;;  %v3103_v11 = vld [vmem:[#allocation36_spill] sm:$0xff]  ;;  %v3104_v13 = vld [vmem:[#allocation38_spill] sm:$0xff]  ;;  %v3105_v10 = vld [vmem:[#allocation35_spill] sm:$0xff]  ;;  %s1245_s12 = scalar_lea.vmem [#allocation2], %s1733_s4  ;;  %s1421_s8 = scalar_lea.vmem [#allocation12], %s1722_s19 }
 0x2ad   : >> { %1252 = vmatprep.subr.mxu0 %v2838_v35  ;;  %1323 = vmatprep.subr.mxu1 %v2844_v37  ;;  %v3106_v7 = vld [vmem:[#allocation32_spill] sm:$0xff]  ;;  %v3107_v12 = vld [vmem:[#allocation37_spill] sm:$0xff]  ;;  %v3108_v6 = vld [vmem:[#allocation31_spill] sm:$0xff]  ;;  %s1240_s10 = sadd.s32 1, %s2187_s10  }
 0x2ae   : >> { %1253 = vmatpush1.msra.mxu0 %v2835_v34  ;;  %1324 = vmatpush1.msra.mxu1 %v2841_v36  ;;  %v3109_v9 = vld [vmem:[#allocation34_spill] sm:$0xff]  ;;  %v3110_v3 = vld [vmem:[#allocation28_spill] sm:$0xff]  ;;  %v3111_v8 = vld [vmem:[#allocation33_spill] sm:$0xff]  ;;  %p1237_p12 = scmp.ge.s32.totalorder %s1240_s10, 8  }
 0x2af   : >> { %1254 = vmatprep.subr.mxu0 %v2826_v31  ;;  %1325 = vmatprep.subr.mxu1 %v2832_v33  ;;  %v3112_v2 = vld [vmem:[#allocation27_spill] sm:$0xff]  ;;  %v3113_v5 = vld [vmem:[#allocation30_spill] sm:$0xff]  ;;  %v3114_v4 = vld [vmem:[#allocation29_spill] sm:$0xff]  ;;  %s1726_s22 = sshll.u32 (%p1237_p12), %s2167_s27, 7  ;;  %s1460_s20 = sshll.u32 (%p1237_p12), %s450_s9, 4  ;;  %s1461_s20 = int_to_ptr.vmem [resolvable:$true] %s1460_s20 }
 0x2b0   : >> { %1255 = vmatpush1.msra.mxu0 %v2823_v30  ;;  %1326 = vmatpush1.msra.mxu1 %v2829_v32  ;;  %v3115_v1 = vld [vmem:[#allocation26_spill] sm:$0xff]  ;;  %v3116_v0 = vld [vmem:[#allocation25_spill] sm:$0xff]  ;;  %s2961_s18 = scalar_lea.hbm (%p1237_p12), %s3050_s6, %s1726_s22  ;;  %s3121_s30 = sld [smem:[#allocation46_spill]] (%p1237_p12) }
 0x2b1   : >> { %1256 = vmatprep.subr.mxu0 %v2814_v27  ;;  %1327 = vmatprep.subr.mxu1 %v2820_v29  ;;  %s1426_s15 = scalar_lea.sflag (%p1237_p12), [#allocation14], %s2425_s21  ;;  %s2021_s23 = scalar_lea.vmem (%p1237_p12), %s1461_s20, 128 }
 0x2b2   : >> { %1257 = vmatpush1.msra.mxu0 %v2811_v26  ;;  %1328 = vmatpush1.msra.mxu1 %v2817_v28  ;;  %p2022_p4 = scmp.ne.s32.totalorder (%p1237_p12), %s1461_s20, %s2021_s23  ;;  %p3122_p9 = scmp.ne.s32.totalorder (%p1237_p12), %s3073_s13, 0 }
 0x2b3   : >> { %1258 = vmatprep.subr.mxu0 %v2802_v18  ;;  %1329 = vmatprep.subr.mxu1 %v2808_v20  ;;  %s2201_s27 = smov (%p1237_p12), [#allocation13]  }
 0x2b4   : >> { %1259 = vmatpush1.msra.mxu0 %v3100_v17  ;;  %1330 = vmatpush1.msra.mxu1 %v2805_v19  ;;  %v2200_v17 = vmov 0.0   ;;  %p2023_p10 = pnand (%p1237_p12), %p2022_p4, %p3122_p9  ;;  %s2025_s10 = sshll.u32 (%p1237_p12), %s2201_s27, 4  ;;  %s2026_s10 = int_to_ptr.vmem [resolvable:$false] %s2025_s10 }
 0x2b5   : >> { %1260 = vmatprep.subr.mxu0 %v2790_v23  ;;  %1331 = vmatprep.subr.mxu1 %v2796_v25  ;;  %s2027_s4 = scalar_lea.vmem (%p1237_p12), %s2026_s10, 256  ;;  %p2028_p6 = scmp.lt.s32.totalorder (%p1237_p12), %s1461_s20, %s2026_s10 }
 0x2b6   : >> { %1261 = vmatpush1.msra.mxu0 %v2787_v22  ;;  %1332 = vmatpush1.msra.mxu1 %v2793_v24  ;;  %s2968_s14 = scalar_lea.hbm (%p1237_p12), %s3121_s30, %s1726_s22  ;;  %p2024_p1 = pneg (%p1237_p12), %p2023_p10 }
 0x2b7   : >> { %1262 = vmatprep.subr.mxu0 %v3101_v15  ;;  %1333 = vmatprep.subr.mxu1 %v2784_v21  ;;  %p2029_p11 = scmp.lt.s32.totalorder (%p1237_p12), %s2027_s4, %s2021_s23 }
 0x2b8   : >> { %1263 = vmatpush1.msra.mxu0 %v3102_v14  ;;  %1334 = vmatpush1.msra.mxu1 %v2781_v16 }
 0x2b9   : >> { %1264 = vmatprep.subr.mxu0 %v3103_v11  ;;  %1335 = vmatprep.subr.mxu1 %v3104_v13  ;;  %p2030_p13 = por (%p1237_p12), %p2029_p11, %p2028_p6 }
 0x2ba   : >> { %1265 = vmatpush1.msra.mxu0 %v3105_v10  ;;  %1314 = vmatprep.mubr.f32.mxu0 %v2200_v17 }
 0x2bb   : >> { %1266 = vmatprep.subr.mxu0 %v3106_v7  ;;  %1336 = vmatpush1.msra.mxu1 %v3107_v12  ;;  %v1248_v12 = vld [vmem:[%s1245_s12 + $0x10] sm:$0xff]  ;;  %p2031_p3 = pnand (%p1237_p12), %p2030_p13, %p2024_p1 }
 0x2bc   : >> { %1267 = vmatpush1.msra.mxu0 %v3108_v6  ;;  %1337 = vmatprep.subr.mxu1 %v3109_v9 }
 0x2bd   : >> { %1268 = vmatprep.subr.mxu0 %v3110_v3  ;;  %1338 = vmatpush1.msra.mxu1 %v3111_v8 }
 0x2be   : >> { %1269 = vmatpush1.msra.mxu0 %v3112_v2  ;;  %1339 = vmatprep.subr.mxu1 %v3113_v5  ;;  %v3118_v2 = vld [vmem:[#allocation23_spill] sm:$0xff] }
 0x2bf   : >> { %1270 = vmatprep.subr.mxu0 %v2730_v62  ;;  %1340 = vmatpush1.msra.mxu1 %v3114_v4  ;;  %v1247_v4 = vld [vmem:[%s1245_s12 + $0x8] sm:$0xff] }
 0x2c0   : >> { %1271 = vmatpush1.msra.mxu0 %v2727_v61  ;;  %1341 = vmatprep.subr.mxu1 %v3115_v1  ;;  %v3117_v1 = vld [vmem:[#allocation24_spill] sm:$0xff] }
 0x2c1   : >> { %1272 = vmatprep.subr.mxu0 %v2718_v58  ;;  %1342 = vmatpush1.msra.mxu1 %v2733_v63 }
 0x2c2   : >> { %1273 = vmatpush1.msra.mxu0 %v2715_v57  ;;  %1343 = vmatprep.subr.mxu1 %v2724_v60 }
 0x2c3   : >> { %1274 = vmatprep.subr.mxu0 %v2706_v54  ;;  %1344 = vmatpush1.msra.mxu1 %v2721_v59 }
 0x2c4   : >> { %1275 = vmatpush1.msra.mxu0 %v2703_v53  ;;  %1345 = vmatprep.subr.mxu1 %v2712_v56 }
 0x2c5   : >> { %1276 = vmatprep.subr.mxu0 %v2694_v51  ;;  %1346 = vmatpush1.msra.mxu1 %v2709_v55 }
 0x2c6   : >> { %1277 = vmatpush1.msra.mxu0 %v2691_v50  ;;  %1347 = vmatprep.subr.mxu1 %v2700_v52 }
 0x2c7   : >> { %1278 = vmatprep.subr.mxu0 %v2682_v47  ;;  %1348 = vmatpush1.msra.mxu1 %v3116_v0  ;;  %v1246_v0 = vld [vmem:[%s1245_s12] sm:$0xff] }
 0x2c8   : >> { %1279 = vmatpush1.msra.mxu0 %v2679_v46  ;;  %1349 = vmatprep.subr.mxu1 %v2688_v49 }
 0x2c9   : >> { %1280 = vmatprep.subr.mxu0 %v2670_v39  ;;  %1350 = vmatpush1.msra.mxu1 %v2685_v48 }
 0x2ca   : >> { %1281 = vmatpush1.msra.mxu0 %v2667_v38  ;;  %1351 = vmatprep.subr.mxu1 %v3117_v1  ;;  %v1249_v1 = vld [vmem:[%s1245_s12 + $0x18] sm:$0xff] }
 0x2cb   : >> { %1315 = vmatmul.mubr.f32.vlgmr.msra.gmra.mxu0 %v2183_v40  ;;  %1352 = vmatpush1.msra.mxu1 %v3118_v2 }
 0x2cc   : >> { %1385 = vmatprep.mubr.f32.mxu1 %v2200_v17 }
 0x2cd   : >> { %1386 = vmatmul.mubr.f32.vlgmr.msra.gmra.mxu1 %v2183_v40 }
 0x38b   : >> { %v1316_v3 = vpop.f32.mrf.mxu0 }
 0x38c   : >> { %v1392_v5 = vadd.f32 %v1316_v3, %v1246_v0 }
 0x38d   : >> { %v1318_v6 = vpop.f32.mrf.mxu0  ;;  %v1387_v10 = vpop.f32.mrf.mxu1 }
 0x38e   : >> { %v1719_v7 = vmul.f32 -1.442695, %v1392_v5  ;;  %v1393_v8 = vadd.f32 %v1318_v6, %v1247_v4  ;;  %v1394_v17 = vadd.f32 %v1387_v10, %v1248_v12 }
 0x38f   : >> { %v1389_v11 = vpop.f32.mrf.mxu1 }
 0x390   : >> { %1867 = vpow2.f32 %v1719_v7  ;;  %v1720_v9 = vmul.f32 -1.442695, %v1393_v8  ;;  %v1395_v2 = vadd.f32 %v1389_v11, %v1249_v1 }
 0x392   : >> { %1869 = vpow2.f32 %v1720_v9  ;;  %v1721_v13 = vmul.f32 -1.442695, %v1395_v2 }
 0x393   : >> { %1871 = vtanh.f32 %v1394_v17 }
 0x394   : >> { %1873 = vpow2.f32 %v1721_v13 }
 0x39d   : >> { %v1868_v40 = vpop.eup %1867 }
 0x39e   : >> { %v1399_v14 = vadd.f32 1.0, %v1868_v40 }
 0x39f   : >> { %v1870_v15 = vpop.eup %1869 }
 0x3a0   : >> { %1875 = vrcp.f32 %v1399_v14  ;;  %v1405_v0 = vadd.f32 1.0, %v1870_v15  ;;  %v1872_v3 = vpop.eup %1871 }
 0x3a1   : >> { %v1874_v4 = vpop.eup %1873 }
 0x3a2   : >> { %1877 = vrcp.f32 %v1405_v0  ;;  %v1412_v7 = vadd.f32 1.0, %v1874_v4 }
 0x3a4   : >> { %1879 = vrcp.f32 %v1412_v7 }
 0x3ad   : >> { %v1876_v5 = vpop.eup %1875 }
 0x3ae   : >> { %v1416_v9 = vmul.f32 %v1876_v5, %v1872_v3 }
 0x3af   : >> { %v1878_v6 = vpop.eup %1877 }
 0x3b0   : >> { %v1415_v8 = vmul.f32 %v2179_v41, %v1878_v6 }
 0x3b1   : >> { %v1880_v10 = vpop.eup %1879 }
 0x3b2   : >> { %v1417_v11 = vadd.f32 %v1416_v9, %v1415_v8  }
 0x3b4   : >> { %1881 = vtanh.f32 %v1417_v11  ;;  %v3119_v41 = vmov %v1417_v11  ;;  %1424 = vst [vmem:[%s457_s17] sm:$0xff] (%p1237_p12), %v1417_v11 }
 0x3c0   : > { %1239 = sbr.rel (!%p1237_p12) target bundleno = 683 (0x2ab), region = 168 }
 0x3c1   : >> { %v1882_v12 = vpop.eup %1881 }
 0x3c2   : >> { %v1419_v1 = vmul.f32 %v1882_v12, %v1880_v10  }
 0x3c4   : >> { %1422 = vst [vmem:[%s1421_s8] sm:$0xff] %v1419_v1  ;;  %v3120_v40 = vmov %v1419_v1  ;;  %1423 = vst [vmem:[%s450_s9] sm:$0xff] (%p1237_p12), %v1419_v1 }
 0x3c5   : > { %2034 = shalt.err (!%p2031_p3)
}
 0x3c6   : > { %s2035_s9 = scalar_lea.hbm %s2961_s18, 128  ;;  %s2039_s8 = scalar_lea.hbm %s3050_s6, 256 }
 0x3c7   : > { %p2036_p8 = scmp.ne.s32.totalorder %s2961_s18, %s2035_s9  ;;  %p2040_p7 = scmp.lt.s32.totalorder %s2961_s18, %s3050_s6 }
 0x3c8   : > { %p2041_p5 = scmp.lt.s32.totalorder %s2039_s8, %s2035_s9 }
 0x3c9   : > { %p2037_p0 = pnand %p2036_p8, %p3122_p9 }
 0x3ca   : > { %p2042_p12 = por %p2041_p5, %p2040_p7 }
 0x3cb   : > { %p2038_p2 = pneg %p2037_p0 }
 0x3cd   : > { %p2043_p4 = pnand %p2042_p12, %p2038_p2 }
 0x3cf   : > { %2046 = shalt.err (!%p2043_p4)
}
 0x3d0   : > { %1748 = dma.vmem_to_hbm [thread:$0]  (%p3122_p9), %s1461_s20, 128, %s2961_s18, %s1426_s15  }
 0x3d1   : > { %s2202_s7 = smov [#allocation12]   ;;  %p3123_p1 = scmp.eq.s32.totalorder %s2341_s1, 1 }
 0x3d2   : > { %s1443_s16 = sshll.u32 %s2202_s7, 4  ;;  %s1444_s16 = int_to_ptr.vmem [resolvable:$true] %s1443_s16 }
 0x3d3   : > { %s2047_s3 = scalar_lea.vmem %s1444_s16, 1024  ;;  %p2054_p13 = scmp.lt.s32.totalorder %s1444_s16, %s1444_s16 }
 0x3d4   : > { %p2048_p10 = scmp.ne.s32.totalorder %s1444_s16, %s2047_s3  ;;  %p2055_p3 = scmp.lt.s32.totalorder %s2047_s3, %s2047_s3 }
 0x3d6   : > { %p2049_p6 = pnand %p2048_p10, %p3123_p1  ;;  %p2056_p8 = por %p2055_p3, %p2054_p13 }
 0x3d8   : > { %p2050_p11 = pneg %p2049_p6 }
 0x3da   : > { %p2057_p0 = pnand %p2056_p8, %p2050_p11 }
 0x3dc   : > { %2060 = shalt.err (!%p2057_p0)
}
 0x3dd   : > { %s2203_s23 = smov 128   ;;  %s2204_s27 = smov 8  }
 0x3de   : > { %p3124_p2 = pmov %p3123_p1  ;;  %s3125_s10 = sld [smem:[#allocation45_spill]] }
 0x3df   : > { %s1474_s4 = sshll.u32 %s457_s17, 4  ;;  %s2205_s12 = smov [#allocation15]   ;;  %s1475_s4 = int_to_ptr.vmem [resolvable:$true] %s1474_s4 }
 0x3e0   : > { %s2071_s9 = scalar_lea.vmem %s1475_s4, 128  ;;  %s2075_s19 = sshll.u32 %s2205_s12, 4  ;;  %s2076_s19 = int_to_ptr.vmem [resolvable:$false] %s2075_s19 }
 0x3e1   : > { %p2072_p7 = scmp.ne.s32.totalorder %s1475_s4, %s2071_s9  ;;  %s2077_s8 = scalar_lea.vmem %s2076_s19, 256 }
 0x3e2   : > { %p2078_p4 = scmp.lt.s32.totalorder %s1475_s4, %s2076_s19  ;;  %p2079_p10 = scmp.lt.s32.totalorder %s2077_s8, %s2071_s9 }
 0x3e3   : > { %p2073_p5 = pnand %p2072_p7, %p3122_p9 }
 0x3e4   : > { %1747 = dma.vmem_to_hbm [thread:$0]  (%p3124_p2), %s1444_s16, 1024, %s3125_s10, [#allocation5], %s2203_s23, %s2203_s23, %s2204_s27  }
 0x3e5   : > { %p2074_p12 = pneg %p2073_p5  ;;  %p2080_p1 = por %p2079_p10, %p2078_p4 }
 0x3e7   : > { %p2081_p6 = pnand %p2080_p1, %p2074_p12 }
 0x3e9   : > { %2084 = shalt.err (!%p2081_p6)
}
 0x3ea   : > { %s2085_s5 = scalar_lea.hbm %s2968_s14, 128  ;;  %s2089_s11 = scalar_lea.hbm %s3121_s30, 256 }
 0x3eb   : > { %p2086_p11 = scmp.ne.s32.totalorder %s2968_s14, %s2085_s5  ;;  %p2090_p8 = scmp.lt.s32.totalorder %s2968_s14, %s3121_s30 }
 0x3ec   : > { %p2091_p0 = scmp.lt.s32.totalorder %s2089_s11, %s2085_s5 }
 0x3ed   : > { %p2087_p13 = pnand %p2086_p11, %p3122_p9 }
 0x3ee   : > { %p2092_p2 = por %p2091_p0, %p2090_p8 }
 0x3ef   : > { %p2088_p3 = pneg %p2087_p13 }
 0x3f1   : > { %p2093_p7 = pnand %p2092_p2, %p2088_p3 }
 0x3f3   : > { %2096 = shalt.err (!%p2093_p7)
}
 0x3f4   : > { %1749 = dma.vmem_to_hbm [thread:$0]  (%p3122_p9), %s1475_s4, 128, %s2968_s14, %s1426_s15  }
 0x3f5   : > { %p3126_p5 = scmp.eq.s32.totalorder %s2341_s1, 1 }
 0x3f7   : > { %2146 = dma.done.wait (%p3126_p5), [#allocation5], 1024   ;;  %p3127_p12 = pmov %p3126_p5 }
 0x3f9   : > { %2148 = vsyncadd (%p3127_p12), [#allocation5], 4294966272 }
 0x3fa PF: > { %s3128_s3 = sadd.s32 4294967294, %s2175_s29   ;;  %p3129_p4 = scmp.ne.s32.totalorder %s3074_s24, 0 }
 0x3fb   : > { %s1490_s23 = sand.u32 1, %s3128_s3   ;;  %p3130_p10 = scmp.ge.s32.totalorder %s2175_s29, 2 }
 0x3fc   : > { %s1491_s13 = scalar_lea.sflag [#allocation14], %s1490_s23 }
 0x3fd   : > { %p1772_p1 = pnand %p3130_p10, %p3129_p4 }
 0x3ff   : > { %p1773_p6 = pneg %p1772_p1 }
 0x401   : > { %2150 = dma.done.wait (%p1773_p6), %s1491_s13, 256  }
 0x402   : > { %2152 = vsyncadd (%p1773_p6), %s1491_s13, 4294967040  ;;  %s29_s29 = sadd.s32 1, %s2175_s29   ;;  %s3131_s1 = sld [smem:[#allocation22_spill]] }
 0x403   : > { %p26_p9 = scmp.ge.s32.totalorder %s29_s29, 4   ;;  %s3132_s21 = sld [smem:[#allocation21_spill]] }
 0x404   : > { %s3133_s24 = smov %s2159_s25  ;;  %s3134_s25 = smov %s2163_s26 }
 0x405   : > { %s3136_s27 = smov %s2171_s28  ;;  %28 = sbr.rel (!%p26_p9) target bundleno = 16 (0x10), region = 179 }
 0x408   : > { %s3135_s26 = smov %s3131_s1 }
 0x409   : > { %s3137_s28 = smov %s3132_s21 }
 0x40a   :  { %1505 = vsyncpa [#allocation4], 1 }
 0x40b   :  { %1507 = vsyncpa [#allocation4 + $0x1], 1 }
 0x40c   :  { %1508 = vsyncpa [#allocation7], 1 }
 0x40d   :  { %1510 = vsyncpa [#allocation7 + $0x1], 1 }
 0x40e   :  { %1511 = vsyncpa [#allocation10], 1 }
 0x40f   :  { %1513 = vsyncpa [#allocation10 + $0x1], 1 }
 0x410   :  { %1514 = vsyncpa [#allocation5], 1 }
 0x411   :  { %1516 = vsyncpa [#allocation5 + $0x1], 1 }
 0x412   :  { %1517 = vsyncpa [#allocation14], 1 }
 0x413   :  { %1519 = vsyncpa [#allocation14 + $0x1], 1 }

</bundles_post_ra>
